<compile_context>
chip_gen: v5e
topology: v5e:2x2
jax: 0.10.0
libtpu: 0.0.40
codegen_flags: <defaults>
</compile_context>

<pallas_src>
import numpy as np

import jax
import jax.numpy as jnp
from jax.experimental import pallas as pl
from jax.experimental.pallas import tpu as pltpu


# ----------------------------- configuration ------------------------------ #
VOCAB    = 128      # lane-dense (multiple of 128)
D_MODEL  = 128      # lane-dense (multiple of 128)
BATCH    = 2
SEQ_LEN  = 8


# ------------------------------- kernel ------------------------------------ #
def _make_gather_kernel(tile):
    """Returns a kernel gathering `tile` embedding rows per grid step."""

    def kernel(ids_ref, emb_hbm, o_ref, row_buf, sems):
        # ids_ref : (n_pad,) int32 in SMEM (scalar prefetch)
        # emb_hbm : (V, D)  table left in HBM (memory_space=pl.ANY)
        # o_ref   : (tile, D) output block in VMEM
        # row_buf : (tile, D) VMEM scratch, sems: (tile,) DMA semaphores
        t = pl.program_id(0)
        base = t * tile

        # Issue all `tile` per-row DMAs (HBM -> VMEM scratch); all in flight.
        copies = []
        for r in range(tile):                      # static unroll (tile is small)
            row = ids_ref[base + r]                # scalar-unit address compute
            cp = pltpu.make_async_copy(emb_hbm.at[row], row_buf.at[r], sems.at[r])
            cp.start()
            copies.append(cp)
        for cp in copies:
            cp.wait()

        # Single lane-dense, full-vreg store of the gathered tile.
        o_ref[...] = row_buf[...]

    return kernel


# ------------------------------- wrapper ------------------------------------ #
def word_embedding(tokens, emb_table, rows_per_step=64):
    """tokens: (B, T) int, emb_table: (V, D) -> (B, T, D) in the table dtype."""
    B, T = tokens.shape
    V, D = emb_table.shape
    n = B * T

    # Token tile: multiple of 8 sublanes, capped at `rows_per_step` DMAs in flight.
    tile = min(rows_per_step, ((n + 7) // 8) * 8)
    tile = max(8, (tile // 8) * 8)
    n_pad = ((n + tile - 1) // tile) * tile

    ids = tokens.reshape(-1).astype(jnp.int32)
    if n_pad != n:
        # padded ids gather row 0; padded rows are sliced off below
        ids = jnp.pad(ids, (0, n_pad - n))

    grid = (n_pad // tile,)

    out = pl.pallas_call(
        _make_gather_kernel(tile),
        out_shape=jax.ShapeDtypeStruct((n_pad, D), emb_table.dtype),
        grid_spec=pltpu.PrefetchScalarGridSpec(
            num_scalar_prefetch=1,                              # ids -> SMEM
            grid=grid,
            in_specs=[pl.BlockSpec(memory_space=pl.ANY)],       # table stays in HBM
            out_specs=pl.BlockSpec((tile, D), lambda t, ids: (t, 0)),
            scratch_shapes=[pltpu.VMEM((tile, D), emb_table.dtype),
                            pltpu.SemaphoreType.DMA((tile,))]),
        compiler_params=pltpu.CompilerParams(
            dimension_semantics=("parallel",)),                 # split tiles across v7x TCs
    )(ids, emb_table)

    if n_pad != n:
        out = out[:n]
    return out.reshape(B, T, D)


# --------------------------------- main ------------------------------------- #
if __name__ == "__main__":
    key = jax.random.PRNGKey(0)
    k_emb, k_tok = jax.random.split(key)

    emb_table = (0.5 * jax.random.normal(k_emb, (VOCAB, D_MODEL))).astype(jnp.float32)
    tokens = jax.random.randint(k_tok, (BATCH, SEQ_LEN), 0, VOCAB, dtype=jnp.int32)

    out = jax.block_until_ready(word_embedding(tokens, emb_table))
    assert out.shape == (BATCH, SEQ_LEN, D_MODEL)

    # pure-JAX reference: plain gather (== nn.Embedding forward); DMA gather is bit-exact
    ref = jax.block_until_ready(emb_table[tokens])
    np.testing.assert_allclose(np.asarray(out), np.asarray(ref), rtol=0, atol=0)

    print("KERNEL_OK")
</pallas_src>

<mosaic_0001>
module attributes {stable_mosaic.version = 11 : i64} {
  func.func @kernel(%arg0: i32, %arg1: memref<16xi32, #tpu.memory_space<smem>>, %arg2: memref<128x128xf32, #tpu.memory_space<any>>, %arg3: memref<16x128xf32, #tpu.memory_space<vmem>>, %arg4: memref<16x128xf32, #tpu.memory_space<vmem>>, %arg5: memref<16x!tpu.dma_semaphore, #tpu.memory_space<semaphore_mem>>) attributes {dimension_semantics = [#tpu.dimension_semantics<parallel>], iteration_bounds = array<i64: 1>, scalar_prefetch = 1 : i64, scratch_operands = 2 : i64, tpu.core_type = #tpu.core_type<tc>, window_params = [{}, {transform_indices = @transform_1, window_bounds = array<i64: 16, 128>}]} {
    %c16_i32 = arith.constant 16 : i32
    %0 = arith.muli %arg0, %c16_i32 : i32
    %c0_i32 = arith.constant 0 : i32
    %1 = arith.addi %0, %c0_i32 : i32
    %2 = arith.index_cast %1 : i32 to index
    %3 = memref.load %arg1[%2] : memref<16xi32, #tpu.memory_space<smem>>
    %c0_i32_0 = arith.constant 0 : i32
    %c0_i32_1 = arith.constant 0 : i32
    %c0_i32_2 = arith.constant 0 : i32
    %4 = tpu.memref_slice %arg2[%3, %c0_i32_2] : memref<128x128xf32, #tpu.memory_space<any>> -> memref<1x128xf32, #tpu.memory_space<any>>
    %5 = tpu.memref_squeeze %4 : memref<1x128xf32, #tpu.memory_space<any>> -> memref<128xf32, #tpu.memory_space<any>>
    %c0_i32_3 = arith.constant 0 : i32
    %6 = tpu.memref_slice %arg4[%c0_i32_0, %c0_i32_3] : memref<16x128xf32, #tpu.memory_space<vmem>> -> memref<1x128xf32, #tpu.memory_space<vmem>>
    %7 = tpu.memref_squeeze %6 : memref<1x128xf32, #tpu.memory_space<vmem>> -> memref<128xf32, #tpu.memory_space<vmem>>
    %8 = tpu.memref_slice %arg5[%c0_i32_1] : memref<16x!tpu.dma_semaphore, #tpu.memory_space<semaphore_mem>> -> memref<1x!tpu.dma_semaphore, #tpu.memory_space<semaphore_mem>>
    %9 = tpu.memref_squeeze %8 : memref<1x!tpu.dma_semaphore, #tpu.memory_space<semaphore_mem>> -> memref<!tpu.dma_semaphore, #tpu.memory_space<semaphore_mem>>
    tpu.enqueue_dma source(%5 : memref<128xf32, #tpu.memory_space<any>>) target(%7 : memref<128xf32, #tpu.memory_space<vmem>>) target_semaphore(%9 : memref<!tpu.dma_semaphore, #tpu.memory_space<semaphore_mem>>)
    %c1_i32 = arith.constant 1 : i32
    %10 = arith.addi %0, %c1_i32 : i32
    %11 = arith.index_cast %10 : i32 to index
    %12 = memref.load %arg1[%11] : memref<16xi32, #tpu.memory_space<smem>>
    %c1_i32_4 = arith.constant 1 : i32
    %c1_i32_5 = arith.constant 1 : i32
    %c0_i32_6 = arith.constant 0 : i32
    %13 = tpu.memref_slice %arg2[%12, %c0_i32_6] : memref<128x128xf32, #tpu.memory_space<any>> -> memref<1x128xf32, #tpu.memory_space<any>>
    %14 = tpu.memref_squeeze %13 : memref<1x128xf32, #tpu.memory_space<any>> -> memref<128xf32, #tpu.memory_space<any>>
    %c0_i32_7 = arith.constant 0 : i32
    %15 = tpu.memref_slice %arg4[%c1_i32_4, %c0_i32_7] : memref<16x128xf32, #tpu.memory_space<vmem>> -> memref<1x128xf32, #tpu.memory_space<vmem>>
    %16 = tpu.memref_squeeze %15 : memref<1x128xf32, #tpu.memory_space<vmem>> -> memref<128xf32, #tpu.memory_space<vmem>>
    %17 = tpu.memref_slice %arg5[%c1_i32_5] : memref<16x!tpu.dma_semaphore, #tpu.memory_space<semaphore_mem>> -> memref<1x!tpu.dma_semaphore, #tpu.memory_space<semaphore_mem>>
    %18 = tpu.memref_squeeze %17 : memref<1x!tpu.dma_semaphore, #tpu.memory_space<semaphore_mem>> -> memref<!tpu.dma_semaphore, #tpu.memory_space<semaphore_mem>>
    tpu.enqueue_dma source(%14 : memref<128xf32, #tpu.memory_space<any>>) target(%16 : memref<128xf32, #tpu.memory_space<vmem>>) target_semaphore(%18 : memref<!tpu.dma_semaphore, #tpu.memory_space<semaphore_mem>>)
    %c2_i32 = arith.constant 2 : i32
    %19 = arith.addi %0, %c2_i32 : i32
    %20 = arith.index_cast %19 : i32 to index
    %21 = memref.load %arg1[%20] : memref<16xi32, #tpu.memory_space<smem>>
    %c2_i32_8 = arith.constant 2 : i32
    %c2_i32_9 = arith.constant 2 : i32
    %c0_i32_10 = arith.constant 0 : i32
    %22 = tpu.memref_slice %arg2[%21, %c0_i32_10] : memref<128x128xf32, #tpu.memory_space<any>> -> memref<1x128xf32, #tpu.memory_space<any>>
    %23 = tpu.memref_squeeze %22 : memref<1x128xf32, #tpu.memory_space<any>> -> memref<128xf32, #tpu.memory_space<any>>
    %c0_i32_11 = arith.constant 0 : i32
    %24 = tpu.memref_slice %arg4[%c2_i32_8, %c0_i32_11] : memref<16x128xf32, #tpu.memory_space<vmem>> -> memref<1x128xf32, #tpu.memory_space<vmem>>
    %25 = tpu.memref_squeeze %24 : memref<1x128xf32, #tpu.memory_space<vmem>> -> memref<128xf32, #tpu.memory_space<vmem>>
    %26 = tpu.memref_slice %arg5[%c2_i32_9] : memref<16x!tpu.dma_semaphore, #tpu.memory_space<semaphore_mem>> -> memref<1x!tpu.dma_semaphore, #tpu.memory_space<semaphore_mem>>
    %27 = tpu.memref_squeeze %26 : memref<1x!tpu.dma_semaphore, #tpu.memory_space<semaphore_mem>> -> memref<!tpu.dma_semaphore, #tpu.memory_space<semaphore_mem>>
    tpu.enqueue_dma source(%23 : memref<128xf32, #tpu.memory_space<any>>) target(%25 : memref<128xf32, #tpu.memory_space<vmem>>) target_semaphore(%27 : memref<!tpu.dma_semaphore, #tpu.memory_space<semaphore_mem>>)
    %c3_i32 = arith.constant 3 : i32
    %28 = arith.addi %0, %c3_i32 : i32
    %29 = arith.index_cast %28 : i32 to index
    %30 = memref.load %arg1[%29] : memref<16xi32, #tpu.memory_space<smem>>
    %c3_i32_12 = arith.constant 3 : i32
    %c3_i32_13 = arith.constant 3 : i32
    %c0_i32_14 = arith.constant 0 : i32
    %31 = tpu.memref_slice %arg2[%30, %c0_i32_14] : memref<128x128xf32, #tpu.memory_space<any>> -> memref<1x128xf32, #tpu.memory_space<any>>
    %32 = tpu.memref_squeeze %31 : memref<1x128xf32, #tpu.memory_space<any>> -> memref<128xf32, #tpu.memory_space<any>>
    %c0_i32_15 = arith.constant 0 : i32
    %33 = tpu.memref_slice %arg4[%c3_i32_12, %c0_i32_15] : memref<16x128xf32, #tpu.memory_space<vmem>> -> memref<1x128xf32, #tpu.memory_space<vmem>>
    %34 = tpu.memref_squeeze %33 : memref<1x128xf32, #tpu.memory_space<vmem>> -> memref<128xf32, #tpu.memory_space<vmem>>
    %35 = tpu.memref_slice %arg5[%c3_i32_13] : memref<16x!tpu.dma_semaphore, #tpu.memory_space<semaphore_mem>> -> memref<1x!tpu.dma_semaphore, #tpu.memory_space<semaphore_mem>>
    %36 = tpu.memref_squeeze %35 : memref<1x!tpu.dma_semaphore, #tpu.memory_space<semaphore_mem>> -> memref<!tpu.dma_semaphore, #tpu.memory_space<semaphore_mem>>
    tpu.enqueue_dma source(%32 : memref<128xf32, #tpu.memory_space<any>>) target(%34 : memref<128xf32, #tpu.memory_space<vmem>>) target_semaphore(%36 : memref<!tpu.dma_semaphore, #tpu.memory_space<semaphore_mem>>)
    %c4_i32 = arith.constant 4 : i32
    %37 = arith.addi %0, %c4_i32 : i32
    %38 = arith.index_cast %37 : i32 to index
    %39 = memref.load %arg1[%38] : memref<16xi32, #tpu.memory_space<smem>>
    %c4_i32_16 = arith.constant 4 : i32
    %c4_i32_17 = arith.constant 4 : i32
    %c0_i32_18 = arith.constant 0 : i32
    %40 = tpu.memref_slice %arg2[%39, %c0_i32_18] : memref<128x128xf32, #tpu.memory_space<any>> -> memref<1x128xf32, #tpu.memory_space<any>>
    %41 = tpu.memref_squeeze %40 : memref<1x128xf32, #tpu.memory_space<any>> -> memref<128xf32, #tpu.memory_space<any>>
    %c0_i32_19 = arith.constant 0 : i32
    %42 = tpu.memref_slice %arg4[%c4_i32_16, %c0_i32_19] : memref<16x128xf32, #tpu.memory_space<vmem>> -> memref<1x128xf32, #tpu.memory_space<vmem>>
    %43 = tpu.memref_squeeze %42 : memref<1x128xf32, #tpu.memory_space<vmem>> -> memref<128xf32, #tpu.memory_space<vmem>>
    %44 = tpu.memref_slice %arg5[%c4_i32_17] : memref<16x!tpu.dma_semaphore, #tpu.memory_space<semaphore_mem>> -> memref<1x!tpu.dma_semaphore, #tpu.memory_space<semaphore_mem>>
    %45 = tpu.memref_squeeze %44 : memref<1x!tpu.dma_semaphore, #tpu.memory_space<semaphore_mem>> -> memref<!tpu.dma_semaphore, #tpu.memory_space<semaphore_mem>>
    tpu.enqueue_dma source(%41 : memref<128xf32, #tpu.memory_space<any>>) target(%43 : memref<128xf32, #tpu.memory_space<vmem>>) target_semaphore(%45 : memref<!tpu.dma_semaphore, #tpu.memory_space<semaphore_mem>>)
    %c5_i32 = arith.constant 5 : i32
    %46 = arith.addi %0, %c5_i32 : i32
    %47 = arith.index_cast %46 : i32 to index
    %48 = memref.load %arg1[%47] : memref<16xi32, #tpu.memory_space<smem>>
    %c5_i32_20 = arith.constant 5 : i32
    %c5_i32_21 = arith.constant 5 : i32
    %c0_i32_22 = arith.constant 0 : i32
    %49 = tpu.memref_slice %arg2[%48, %c0_i32_22] : memref<128x128xf32, #tpu.memory_space<any>> -> memref<1x128xf32, #tpu.memory_space<any>>
    %50 = tpu.memref_squeeze %49 : memref<1x128xf32, #tpu.memory_space<any>> -> memref<128xf32, #tpu.memory_space<any>>
    %c0_i32_23 = arith.constant 0 : i32
    %51 = tpu.memref_slice %arg4[%c5_i32_20, %c0_i32_23] : memref<16x128xf32, #tpu.memory_space<vmem>> -> memref<1x128xf32, #tpu.memory_space<vmem>>
    %52 = tpu.memref_squeeze %51 : memref<1x128xf32, #tpu.memory_space<vmem>> -> memref<128xf32, #tpu.memory_space<vmem>>
    %53 = tpu.memref_slice %arg5[%c5_i32_21] : memref<16x!tpu.dma_semaphore, #tpu.memory_space<semaphore_mem>> -> memref<1x!tpu.dma_semaphore, #tpu.memory_space<semaphore_mem>>
    %54 = tpu.memref_squeeze %53 : memref<1x!tpu.dma_semaphore, #tpu.memory_space<semaphore_mem>> -> memref<!tpu.dma_semaphore, #tpu.memory_space<semaphore_mem>>
    tpu.enqueue_dma source(%50 : memref<128xf32, #tpu.memory_space<any>>) target(%52 : memref<128xf32, #tpu.memory_space<vmem>>) target_semaphore(%54 : memref<!tpu.dma_semaphore, #tpu.memory_space<semaphore_mem>>)
    %c6_i32 = arith.constant 6 : i32
    %55 = arith.addi %0, %c6_i32 : i32
    %56 = arith.index_cast %55 : i32 to index
    %57 = memref.load %arg1[%56] : memref<16xi32, #tpu.memory_space<smem>>
    %c6_i32_24 = arith.constant 6 : i32
    %c6_i32_25 = arith.constant 6 : i32
    %c0_i32_26 = arith.constant 0 : i32
    %58 = tpu.memref_slice %arg2[%57, %c0_i32_26] : memref<128x128xf32, #tpu.memory_space<any>> -> memref<1x128xf32, #tpu.memory_space<any>>
    %59 = tpu.memref_squeeze %58 : memref<1x128xf32, #tpu.memory_space<any>> -> memref<128xf32, #tpu.memory_space<any>>
    %c0_i32_27 = arith.constant 0 : i32
    %60 = tpu.memref_slice %arg4[%c6_i32_24, %c0_i32_27] : memref<16x128xf32, #tpu.memory_space<vmem>> -> memref<1x128xf32, #tpu.memory_space<vmem>>
    %61 = tpu.memref_squeeze %60 : memref<1x128xf32, #tpu.memory_space<vmem>> -> memref<128xf32, #tpu.memory_space<vmem>>
    %62 = tpu.memref_slice %arg5[%c6_i32_25] : memref<16x!tpu.dma_semaphore, #tpu.memory_space<semaphore_mem>> -> memref<1x!tpu.dma_semaphore, #tpu.memory_space<semaphore_mem>>
    %63 = tpu.memref_squeeze %62 : memref<1x!tpu.dma_semaphore, #tpu.memory_space<semaphore_mem>> -> memref<!tpu.dma_semaphore, #tpu.memory_space<semaphore_mem>>
    tpu.enqueue_dma source(%59 : memref<128xf32, #tpu.memory_space<any>>) target(%61 : memref<128xf32, #tpu.memory_space<vmem>>) target_semaphore(%63 : memref<!tpu.dma_semaphore, #tpu.memory_space<semaphore_mem>>)
    %c7_i32 = arith.constant 7 : i32
    %64 = arith.addi %0, %c7_i32 : i32
    %65 = arith.index_cast %64 : i32 to index
    %66 = memref.load %arg1[%65] : memref<16xi32, #tpu.memory_space<smem>>
    %c7_i32_28 = arith.constant 7 : i32
    %c7_i32_29 = arith.constant 7 : i32
    %c0_i32_30 = arith.constant 0 : i32
    %67 = tpu.memref_slice %arg2[%66, %c0_i32_30] : memref<128x128xf32, #tpu.memory_space<any>> -> memref<1x128xf32, #tpu.memory_space<any>>
    %68 = tpu.memref_squeeze %67 : memref<1x128xf32, #tpu.memory_space<any>> -> memref<128xf32, #tpu.memory_space<any>>
    %c0_i32_31 = arith.constant 0 : i32
    %69 = tpu.memref_slice %arg4[%c7_i32_28, %c0_i32_31] : memref<16x128xf32, #tpu.memory_space<vmem>> -> memref<1x128xf32, #tpu.memory_space<vmem>>
    %70 = tpu.memref_squeeze %69 : memref<1x128xf32, #tpu.memory_space<vmem>> -> memref<128xf32, #tpu.memory_space<vmem>>
    %71 = tpu.memref_slice %arg5[%c7_i32_29] : memref<16x!tpu.dma_semaphore, #tpu.memory_space<semaphore_mem>> -> memref<1x!tpu.dma_semaphore, #tpu.memory_space<semaphore_mem>>
    %72 = tpu.memref_squeeze %71 : memref<1x!tpu.dma_semaphore, #tpu.memory_space<semaphore_mem>> -> memref<!tpu.dma_semaphore, #tpu.memory_space<semaphore_mem>>
    tpu.enqueue_dma source(%68 : memref<128xf32, #tpu.memory_space<any>>) target(%70 : memref<128xf32, #tpu.memory_space<vmem>>) target_semaphore(%72 : memref<!tpu.dma_semaphore, #tpu.memory_space<semaphore_mem>>)
    %c8_i32 = arith.constant 8 : i32
    %73 = arith.addi %0, %c8_i32 : i32
    %74 = arith.index_cast %73 : i32 to index
    %75 = memref.load %arg1[%74] : memref<16xi32, #tpu.memory_space<smem>>
    %c8_i32_32 = arith.constant 8 : i32
    %c8_i32_33 = arith.constant 8 : i32
    %c0_i32_34 = arith.constant 0 : i32
    %76 = tpu.memref_slice %arg2[%75, %c0_i32_34] : memref<128x128xf32, #tpu.memory_space<any>> -> memref<1x128xf32, #tpu.memory_space<any>>
    %77 = tpu.memref_squeeze %76 : memref<1x128xf32, #tpu.memory_space<any>> -> memref<128xf32, #tpu.memory_space<any>>
    %c0_i32_35 = arith.constant 0 : i32
    %78 = tpu.memref_slice %arg4[%c8_i32_32, %c0_i32_35] : memref<16x128xf32, #tpu.memory_space<vmem>> -> memref<1x128xf32, #tpu.memory_space<vmem>>
    %79 = tpu.memref_squeeze %78 : memref<1x128xf32, #tpu.memory_space<vmem>> -> memref<128xf32, #tpu.memory_space<vmem>>
    %80 = tpu.memref_slice %arg5[%c8_i32_33] : memref<16x!tpu.dma_semaphore, #tpu.memory_space<semaphore_mem>> -> memref<1x!tpu.dma_semaphore, #tpu.memory_space<semaphore_mem>>
    %81 = tpu.memref_squeeze %80 : memref<1x!tpu.dma_semaphore, #tpu.memory_space<semaphore_mem>> -> memref<!tpu.dma_semaphore, #tpu.memory_space<semaphore_mem>>
    tpu.enqueue_dma source(%77 : memref<128xf32, #tpu.memory_space<any>>) target(%79 : memref<128xf32, #tpu.memory_space<vmem>>) target_semaphore(%81 : memref<!tpu.dma_semaphore, #tpu.memory_space<semaphore_mem>>)
    %c9_i32 = arith.constant 9 : i32
    %82 = arith.addi %0, %c9_i32 : i32
    %83 = arith.index_cast %82 : i32 to index
    %84 = memref.load %arg1[%83] : memref<16xi32, #tpu.memory_space<smem>>
    %c9_i32_36 = arith.constant 9 : i32
    %c9_i32_37 = arith.constant 9 : i32
    %c0_i32_38 = arith.constant 0 : i32
    %85 = tpu.memref_slice %arg2[%84, %c0_i32_38] : memref<128x128xf32, #tpu.memory_space<any>> -> memref<1x128xf32, #tpu.memory_space<any>>
    %86 = tpu.memref_squeeze %85 : memref<1x128xf32, #tpu.memory_space<any>> -> memref<128xf32, #tpu.memory_space<any>>
    %c0_i32_39 = arith.constant 0 : i32
    %87 = tpu.memref_slice %arg4[%c9_i32_36, %c0_i32_39] : memref<16x128xf32, #tpu.memory_space<vmem>> -> memref<1x128xf32, #tpu.memory_space<vmem>>
    %88 = tpu.memref_squeeze %87 : memref<1x128xf32, #tpu.memory_space<vmem>> -> memref<128xf32, #tpu.memory_space<vmem>>
    %89 = tpu.memref_slice %arg5[%c9_i32_37] : memref<16x!tpu.dma_semaphore, #tpu.memory_space<semaphore_mem>> -> memref<1x!tpu.dma_semaphore, #tpu.memory_space<semaphore_mem>>
    %90 = tpu.memref_squeeze %89 : memref<1x!tpu.dma_semaphore, #tpu.memory_space<semaphore_mem>> -> memref<!tpu.dma_semaphore, #tpu.memory_space<semaphore_mem>>
    tpu.enqueue_dma source(%86 : memref<128xf32, #tpu.memory_space<any>>) target(%88 : memref<128xf32, #tpu.memory_space<vmem>>) target_semaphore(%90 : memref<!tpu.dma_semaphore, #tpu.memory_space<semaphore_mem>>)
    %c10_i32 = arith.constant 10 : i32
    %91 = arith.addi %0, %c10_i32 : i32
    %92 = arith.index_cast %91 : i32 to index
    %93 = memref.load %arg1[%92] : memref<16xi32, #tpu.memory_space<smem>>
    %c10_i32_40 = arith.constant 10 : i32
    %c10_i32_41 = arith.constant 10 : i32
    %c0_i32_42 = arith.constant 0 : i32
    %94 = tpu.memref_slice %arg2[%93, %c0_i32_42] : memref<128x128xf32, #tpu.memory_space<any>> -> memref<1x128xf32, #tpu.memory_space<any>>
    %95 = tpu.memref_squeeze %94 : memref<1x128xf32, #tpu.memory_space<any>> -> memref<128xf32, #tpu.memory_space<any>>
    %c0_i32_43 = arith.constant 0 : i32
    %96 = tpu.memref_slice %arg4[%c10_i32_40, %c0_i32_43] : memref<16x128xf32, #tpu.memory_space<vmem>> -> memref<1x128xf32, #tpu.memory_space<vmem>>
    %97 = tpu.memref_squeeze %96 : memref<1x128xf32, #tpu.memory_space<vmem>> -> memref<128xf32, #tpu.memory_space<vmem>>
    %98 = tpu.memref_slice %arg5[%c10_i32_41] : memref<16x!tpu.dma_semaphore, #tpu.memory_space<semaphore_mem>> -> memref<1x!tpu.dma_semaphore, #tpu.memory_space<semaphore_mem>>
    %99 = tpu.memref_squeeze %98 : memref<1x!tpu.dma_semaphore, #tpu.memory_space<semaphore_mem>> -> memref<!tpu.dma_semaphore, #tpu.memory_space<semaphore_mem>>
    tpu.enqueue_dma source(%95 : memref<128xf32, #tpu.memory_space<any>>) target(%97 : memref<128xf32, #tpu.memory_space<vmem>>) target_semaphore(%99 : memref<!tpu.dma_semaphore, #tpu.memory_space<semaphore_mem>>)
    %c11_i32 = arith.constant 11 : i32
    %100 = arith.addi %0, %c11_i32 : i32
    %101 = arith.index_cast %100 : i32 to index
    %102 = memref.load %arg1[%101] : memref<16xi32, #tpu.memory_space<smem>>
    %c11_i32_44 = arith.constant 11 : i32
    %c11_i32_45 = arith.constant 11 : i32
    %c0_i32_46 = arith.constant 0 : i32
    %103 = tpu.memref_slice %arg2[%102, %c0_i32_46] : memref<128x128xf32, #tpu.memory_space<any>> -> memref<1x128xf32, #tpu.memory_space<any>>
    %104 = tpu.memref_squeeze %103 : memref<1x128xf32, #tpu.memory_space<any>> -> memref<128xf32, #tpu.memory_space<any>>
    %c0_i32_47 = arith.constant 0 : i32
    %105 = tpu.memref_slice %arg4[%c11_i32_44, %c0_i32_47] : memref<16x128xf32, #tpu.memory_space<vmem>> -> memref<1x128xf32, #tpu.memory_space<vmem>>
    %106 = tpu.memref_squeeze %105 : memref<1x128xf32, #tpu.memory_space<vmem>> -> memref<128xf32, #tpu.memory_space<vmem>>
    %107 = tpu.memref_slice %arg5[%c11_i32_45] : memref<16x!tpu.dma_semaphore, #tpu.memory_space<semaphore_mem>> -> memref<1x!tpu.dma_semaphore, #tpu.memory_space<semaphore_mem>>
    %108 = tpu.memref_squeeze %107 : memref<1x!tpu.dma_semaphore, #tpu.memory_space<semaphore_mem>> -> memref<!tpu.dma_semaphore, #tpu.memory_space<semaphore_mem>>
    tpu.enqueue_dma source(%104 : memref<128xf32, #tpu.memory_space<any>>) target(%106 : memref<128xf32, #tpu.memory_space<vmem>>) target_semaphore(%108 : memref<!tpu.dma_semaphore, #tpu.memory_space<semaphore_mem>>)
    %c12_i32 = arith.constant 12 : i32
    %109 = arith.addi %0, %c12_i32 : i32
    %110 = arith.index_cast %109 : i32 to index
    %111 = memref.load %arg1[%110] : memref<16xi32, #tpu.memory_space<smem>>
    %c12_i32_48 = arith.constant 12 : i32
    %c12_i32_49 = arith.constant 12 : i32
    %c0_i32_50 = arith.constant 0 : i32
    %112 = tpu.memref_slice %arg2[%111, %c0_i32_50] : memref<128x128xf32, #tpu.memory_space<any>> -> memref<1x128xf32, #tpu.memory_space<any>>
    %113 = tpu.memref_squeeze %112 : memref<1x128xf32, #tpu.memory_space<any>> -> memref<128xf32, #tpu.memory_space<any>>
    %c0_i32_51 = arith.constant 0 : i32
    %114 = tpu.memref_slice %arg4[%c12_i32_48, %c0_i32_51] : memref<16x128xf32, #tpu.memory_space<vmem>> -> memref<1x128xf32, #tpu.memory_space<vmem>>
    %115 = tpu.memref_squeeze %114 : memref<1x128xf32, #tpu.memory_space<vmem>> -> memref<128xf32, #tpu.memory_space<vmem>>
    %116 = tpu.memref_slice %arg5[%c12_i32_49] : memref<16x!tpu.dma_semaphore, #tpu.memory_space<semaphore_mem>> -> memref<1x!tpu.dma_semaphore, #tpu.memory_space<semaphore_mem>>
    %117 = tpu.memref_squeeze %116 : memref<1x!tpu.dma_semaphore, #tpu.memory_space<semaphore_mem>> -> memref<!tpu.dma_semaphore, #tpu.memory_space<semaphore_mem>>
    tpu.enqueue_dma source(%113 : memref<128xf32, #tpu.memory_space<any>>) target(%115 : memref<128xf32, #tpu.memory_space<vmem>>) target_semaphore(%117 : memref<!tpu.dma_semaphore, #tpu.memory_space<semaphore_mem>>)
    %c13_i32 = arith.constant 13 : i32
    %118 = arith.addi %0, %c13_i32 : i32
    %119 = arith.index_cast %118 : i32 to index
    %120 = memref.load %arg1[%119] : memref<16xi32, #tpu.memory_space<smem>>
    %c13_i32_52 = arith.constant 13 : i32
    %c13_i32_53 = arith.constant 13 : i32
    %c0_i32_54 = arith.constant 0 : i32
    %121 = tpu.memref_slice %arg2[%120, %c0_i32_54] : memref<128x128xf32, #tpu.memory_space<any>> -> memref<1x128xf32, #tpu.memory_space<any>>
    %122 = tpu.memref_squeeze %121 : memref<1x128xf32, #tpu.memory_space<any>> -> memref<128xf32, #tpu.memory_space<any>>
    %c0_i32_55 = arith.constant 0 : i32
    %123 = tpu.memref_slice %arg4[%c13_i32_52, %c0_i32_55] : memref<16x128xf32, #tpu.memory_space<vmem>> -> memref<1x128xf32, #tpu.memory_space<vmem>>
    %124 = tpu.memref_squeeze %123 : memref<1x128xf32, #tpu.memory_space<vmem>> -> memref<128xf32, #tpu.memory_space<vmem>>
    %125 = tpu.memref_slice %arg5[%c13_i32_53] : memref<16x!tpu.dma_semaphore, #tpu.memory_space<semaphore_mem>> -> memref<1x!tpu.dma_semaphore, #tpu.memory_space<semaphore_mem>>
    %126 = tpu.memref_squeeze %125 : memref<1x!tpu.dma_semaphore, #tpu.memory_space<semaphore_mem>> -> memref<!tpu.dma_semaphore, #tpu.memory_space<semaphore_mem>>
    tpu.enqueue_dma source(%122 : memref<128xf32, #tpu.memory_space<any>>) target(%124 : memref<128xf32, #tpu.memory_space<vmem>>) target_semaphore(%126 : memref<!tpu.dma_semaphore, #tpu.memory_space<semaphore_mem>>)
    %c14_i32 = arith.constant 14 : i32
    %127 = arith.addi %0, %c14_i32 : i32
    %128 = arith.index_cast %127 : i32 to index
    %129 = memref.load %arg1[%128] : memref<16xi32, #tpu.memory_space<smem>>
    %c14_i32_56 = arith.constant 14 : i32
    %c14_i32_57 = arith.constant 14 : i32
    %c0_i32_58 = arith.constant 0 : i32
    %130 = tpu.memref_slice %arg2[%129, %c0_i32_58] : memref<128x128xf32, #tpu.memory_space<any>> -> memref<1x128xf32, #tpu.memory_space<any>>
    %131 = tpu.memref_squeeze %130 : memref<1x128xf32, #tpu.memory_space<any>> -> memref<128xf32, #tpu.memory_space<any>>
    %c0_i32_59 = arith.constant 0 : i32
    %132 = tpu.memref_slice %arg4[%c14_i32_56, %c0_i32_59] : memref<16x128xf32, #tpu.memory_space<vmem>> -> memref<1x128xf32, #tpu.memory_space<vmem>>
    %133 = tpu.memref_squeeze %132 : memref<1x128xf32, #tpu.memory_space<vmem>> -> memref<128xf32, #tpu.memory_space<vmem>>
    %134 = tpu.memref_slice %arg5[%c14_i32_57] : memref<16x!tpu.dma_semaphore, #tpu.memory_space<semaphore_mem>> -> memref<1x!tpu.dma_semaphore, #tpu.memory_space<semaphore_mem>>
    %135 = tpu.memref_squeeze %134 : memref<1x!tpu.dma_semaphore, #tpu.memory_space<semaphore_mem>> -> memref<!tpu.dma_semaphore, #tpu.memory_space<semaphore_mem>>
    tpu.enqueue_dma source(%131 : memref<128xf32, #tpu.memory_space<any>>) target(%133 : memref<128xf32, #tpu.memory_space<vmem>>) target_semaphore(%135 : memref<!tpu.dma_semaphore, #tpu.memory_space<semaphore_mem>>)
    %c15_i32 = arith.constant 15 : i32
    %136 = arith.addi %0, %c15_i32 : i32
    %137 = arith.index_cast %136 : i32 to index
    %138 = memref.load %arg1[%137] : memref<16xi32, #tpu.memory_space<smem>>
    %c15_i32_60 = arith.constant 15 : i32
    %c15_i32_61 = arith.constant 15 : i32
    %c0_i32_62 = arith.constant 0 : i32
    %139 = tpu.memref_slice %arg2[%138, %c0_i32_62] : memref<128x128xf32, #tpu.memory_space<any>> -> memref<1x128xf32, #tpu.memory_space<any>>
    %140 = tpu.memref_squeeze %139 : memref<1x128xf32, #tpu.memory_space<any>> -> memref<128xf32, #tpu.memory_space<any>>
    %c0_i32_63 = arith.constant 0 : i32
    %141 = tpu.memref_slice %arg4[%c15_i32_60, %c0_i32_63] : memref<16x128xf32, #tpu.memory_space<vmem>> -> memref<1x128xf32, #tpu.memory_space<vmem>>
    %142 = tpu.memref_squeeze %141 : memref<1x128xf32, #tpu.memory_space<vmem>> -> memref<128xf32, #tpu.memory_space<vmem>>
    %143 = tpu.memref_slice %arg5[%c15_i32_61] : memref<16x!tpu.dma_semaphore, #tpu.memory_space<semaphore_mem>> -> memref<1x!tpu.dma_semaphore, #tpu.memory_space<semaphore_mem>>
    %144 = tpu.memref_squeeze %143 : memref<1x!tpu.dma_semaphore, #tpu.memory_space<semaphore_mem>> -> memref<!tpu.dma_semaphore, #tpu.memory_space<semaphore_mem>>
    tpu.enqueue_dma source(%140 : memref<128xf32, #tpu.memory_space<any>>) target(%142 : memref<128xf32, #tpu.memory_space<vmem>>) target_semaphore(%144 : memref<!tpu.dma_semaphore, #tpu.memory_space<semaphore_mem>>)
    %c0_i32_64 = arith.constant 0 : i32
    %c0_i32_65 = arith.constant 0 : i32
    %c0_i32_66 = arith.constant 0 : i32
    %145 = tpu.memref_slice %arg2[%3, %c0_i32_66] : memref<128x128xf32, #tpu.memory_space<any>> -> memref<1x128xf32, #tpu.memory_space<any>>
    %146 = tpu.memref_squeeze %145 : memref<1x128xf32, #tpu.memory_space<any>> -> memref<128xf32, #tpu.memory_space<any>>
    %c0_i32_67 = arith.constant 0 : i32
    %147 = tpu.memref_slice %arg4[%c0_i32_64, %c0_i32_67] : memref<16x128xf32, #tpu.memory_space<vmem>> -> memref<1x128xf32, #tpu.memory_space<vmem>>
    %148 = tpu.memref_squeeze %147 : memref<1x128xf32, #tpu.memory_space<vmem>> -> memref<128xf32, #tpu.memory_space<vmem>>
    %149 = tpu.memref_slice %arg5[%c0_i32_65] : memref<16x!tpu.dma_semaphore, #tpu.memory_space<semaphore_mem>> -> memref<1x!tpu.dma_semaphore, #tpu.memory_space<semaphore_mem>>
    %150 = tpu.memref_squeeze %149 : memref<1x!tpu.dma_semaphore, #tpu.memory_space<semaphore_mem>> -> memref<!tpu.dma_semaphore, #tpu.memory_space<semaphore_mem>>
    tpu.wait_dma2 semaphore(%150 : memref<!tpu.dma_semaphore, #tpu.memory_space<semaphore_mem>>) src(%146 : memref<128xf32, #tpu.memory_space<any>>) dst(%148 : memref<128xf32, #tpu.memory_space<vmem>>)
    %c1_i32_68 = arith.constant 1 : i32
    %c1_i32_69 = arith.constant 1 : i32
    %c0_i32_70 = arith.constant 0 : i32
    %151 = tpu.memref_slice %arg2[%12, %c0_i32_70] : memref<128x128xf32, #tpu.memory_space<any>> -> memref<1x128xf32, #tpu.memory_space<any>>
    %152 = tpu.memref_squeeze %151 : memref<1x128xf32, #tpu.memory_space<any>> -> memref<128xf32, #tpu.memory_space<any>>
    %c0_i32_71 = arith.constant 0 : i32
    %153 = tpu.memref_slice %arg4[%c1_i32_68, %c0_i32_71] : memref<16x128xf32, #tpu.memory_space<vmem>> -> memref<1x128xf32, #tpu.memory_space<vmem>>
    %154 = tpu.memref_squeeze %153 : memref<1x128xf32, #tpu.memory_space<vmem>> -> memref<128xf32, #tpu.memory_space<vmem>>
    %155 = tpu.memref_slice %arg5[%c1_i32_69] : memref<16x!tpu.dma_semaphore, #tpu.memory_space<semaphore_mem>> -> memref<1x!tpu.dma_semaphore, #tpu.memory_space<semaphore_mem>>
    %156 = tpu.memref_squeeze %155 : memref<1x!tpu.dma_semaphore, #tpu.memory_space<semaphore_mem>> -> memref<!tpu.dma_semaphore, #tpu.memory_space<semaphore_mem>>
    tpu.wait_dma2 semaphore(%156 : memref<!tpu.dma_semaphore, #tpu.memory_space<semaphore_mem>>) src(%152 : memref<128xf32, #tpu.memory_space<any>>) dst(%154 : memref<128xf32, #tpu.memory_space<vmem>>)
    %c2_i32_72 = arith.constant 2 : i32
    %c2_i32_73 = arith.constant 2 : i32
    %c0_i32_74 = arith.constant 0 : i32
    %157 = tpu.memref_slice %arg2[%21, %c0_i32_74] : memref<128x128xf32, #tpu.memory_space<any>> -> memref<1x128xf32, #tpu.memory_space<any>>
    %158 = tpu.memref_squeeze %157 : memref<1x128xf32, #tpu.memory_space<any>> -> memref<128xf32, #tpu.memory_space<any>>
    %c0_i32_75 = arith.constant 0 : i32
    %159 = tpu.memref_slice %arg4[%c2_i32_72, %c0_i32_75] : memref<16x128xf32, #tpu.memory_space<vmem>> -> memref<1x128xf32, #tpu.memory_space<vmem>>
    %160 = tpu.memref_squeeze %159 : memref<1x128xf32, #tpu.memory_space<vmem>> -> memref<128xf32, #tpu.memory_space<vmem>>
    %161 = tpu.memref_slice %arg5[%c2_i32_73] : memref<16x!tpu.dma_semaphore, #tpu.memory_space<semaphore_mem>> -> memref<1x!tpu.dma_semaphore, #tpu.memory_space<semaphore_mem>>
    %162 = tpu.memref_squeeze %161 : memref<1x!tpu.dma_semaphore, #tpu.memory_space<semaphore_mem>> -> memref<!tpu.dma_semaphore, #tpu.memory_space<semaphore_mem>>
    tpu.wait_dma2 semaphore(%162 : memref<!tpu.dma_semaphore, #tpu.memory_space<semaphore_mem>>) src(%158 : memref<128xf32, #tpu.memory_space<any>>) dst(%160 : memref<128xf32, #tpu.memory_space<vmem>>)
    %c3_i32_76 = arith.constant 3 : i32
    %c3_i32_77 = arith.constant 3 : i32
    %c0_i32_78 = arith.constant 0 : i32
    %163 = tpu.memref_slice %arg2[%30, %c0_i32_78] : memref<128x128xf32, #tpu.memory_space<any>> -> memref<1x128xf32, #tpu.memory_space<any>>
    %164 = tpu.memref_squeeze %163 : memref<1x128xf32, #tpu.memory_space<any>> -> memref<128xf32, #tpu.memory_space<any>>
    %c0_i32_79 = arith.constant 0 : i32
    %165 = tpu.memref_slice %arg4[%c3_i32_76, %c0_i32_79] : memref<16x128xf32, #tpu.memory_space<vmem>> -> memref<1x128xf32, #tpu.memory_space<vmem>>
    %166 = tpu.memref_squeeze %165 : memref<1x128xf32, #tpu.memory_space<vmem>> -> memref<128xf32, #tpu.memory_space<vmem>>
    %167 = tpu.memref_slice %arg5[%c3_i32_77] : memref<16x!tpu.dma_semaphore, #tpu.memory_space<semaphore_mem>> -> memref<1x!tpu.dma_semaphore, #tpu.memory_space<semaphore_mem>>
    %168 = tpu.memref_squeeze %167 : memref<1x!tpu.dma_semaphore, #tpu.memory_space<semaphore_mem>> -> memref<!tpu.dma_semaphore, #tpu.memory_space<semaphore_mem>>
    tpu.wait_dma2 semaphore(%168 : memref<!tpu.dma_semaphore, #tpu.memory_space<semaphore_mem>>) src(%164 : memref<128xf32, #tpu.memory_space<any>>) dst(%166 : memref<128xf32, #tpu.memory_space<vmem>>)
    %c4_i32_80 = arith.constant 4 : i32
    %c4_i32_81 = arith.constant 4 : i32
    %c0_i32_82 = arith.constant 0 : i32
    %169 = tpu.memref_slice %arg2[%39, %c0_i32_82] : memref<128x128xf32, #tpu.memory_space<any>> -> memref<1x128xf32, #tpu.memory_space<any>>
    %170 = tpu.memref_squeeze %169 : memref<1x128xf32, #tpu.memory_space<any>> -> memref<128xf32, #tpu.memory_space<any>>
    %c0_i32_83 = arith.constant 0 : i32
    %171 = tpu.memref_slice %arg4[%c4_i32_80, %c0_i32_83] : memref<16x128xf32, #tpu.memory_space<vmem>> -> memref<1x128xf32, #tpu.memory_space<vmem>>
    %172 = tpu.memref_squeeze %171 : memref<1x128xf32, #tpu.memory_space<vmem>> -> memref<128xf32, #tpu.memory_space<vmem>>
    %173 = tpu.memref_slice %arg5[%c4_i32_81] : memref<16x!tpu.dma_semaphore, #tpu.memory_space<semaphore_mem>> -> memref<1x!tpu.dma_semaphore, #tpu.memory_space<semaphore_mem>>
    %174 = tpu.memref_squeeze %173 : memref<1x!tpu.dma_semaphore, #tpu.memory_space<semaphore_mem>> -> memref<!tpu.dma_semaphore, #tpu.memory_space<semaphore_mem>>
    tpu.wait_dma2 semaphore(%174 : memref<!tpu.dma_semaphore, #tpu.memory_space<semaphore_mem>>) src(%170 : memref<128xf32, #tpu.memory_space<any>>) dst(%172 : memref<128xf32, #tpu.memory_space<vmem>>)
    %c5_i32_84 = arith.constant 5 : i32
    %c5_i32_85 = arith.constant 5 : i32
    %c0_i32_86 = arith.constant 0 : i32
    %175 = tpu.memref_slice %arg2[%48, %c0_i32_86] : memref<128x128xf32, #tpu.memory_space<any>> -> memref<1x128xf32, #tpu.memory_space<any>>
    %176 = tpu.memref_squeeze %175 : memref<1x128xf32, #tpu.memory_space<any>> -> memref<128xf32, #tpu.memory_space<any>>
    %c0_i32_87 = arith.constant 0 : i32
    %177 = tpu.memref_slice %arg4[%c5_i32_84, %c0_i32_87] : memref<16x128xf32, #tpu.memory_space<vmem>> -> memref<1x128xf32, #tpu.memory_space<vmem>>
    %178 = tpu.memref_squeeze %177 : memref<1x128xf32, #tpu.memory_space<vmem>> -> memref<128xf32, #tpu.memory_space<vmem>>
    %179 = tpu.memref_slice %arg5[%c5_i32_85] : memref<16x!tpu.dma_semaphore, #tpu.memory_space<semaphore_mem>> -> memref<1x!tpu.dma_semaphore, #tpu.memory_space<semaphore_mem>>
    %180 = tpu.memref_squeeze %179 : memref<1x!tpu.dma_semaphore, #tpu.memory_space<semaphore_mem>> -> memref<!tpu.dma_semaphore, #tpu.memory_space<semaphore_mem>>
    tpu.wait_dma2 semaphore(%180 : memref<!tpu.dma_semaphore, #tpu.memory_space<semaphore_mem>>) src(%176 : memref<128xf32, #tpu.memory_space<any>>) dst(%178 : memref<128xf32, #tpu.memory_space<vmem>>)
    %c6_i32_88 = arith.constant 6 : i32
    %c6_i32_89 = arith.constant 6 : i32
    %c0_i32_90 = arith.constant 0 : i32
    %181 = tpu.memref_slice %arg2[%57, %c0_i32_90] : memref<128x128xf32, #tpu.memory_space<any>> -> memref<1x128xf32, #tpu.memory_space<any>>
    %182 = tpu.memref_squeeze %181 : memref<1x128xf32, #tpu.memory_space<any>> -> memref<128xf32, #tpu.memory_space<any>>
    %c0_i32_91 = arith.constant 0 : i32
    %183 = tpu.memref_slice %arg4[%c6_i32_88, %c0_i32_91] : memref<16x128xf32, #tpu.memory_space<vmem>> -> memref<1x128xf32, #tpu.memory_space<vmem>>
    %184 = tpu.memref_squeeze %183 : memref<1x128xf32, #tpu.memory_space<vmem>> -> memref<128xf32, #tpu.memory_space<vmem>>
    %185 = tpu.memref_slice %arg5[%c6_i32_89] : memref<16x!tpu.dma_semaphore, #tpu.memory_space<semaphore_mem>> -> memref<1x!tpu.dma_semaphore, #tpu.memory_space<semaphore_mem>>
    %186 = tpu.memref_squeeze %185 : memref<1x!tpu.dma_semaphore, #tpu.memory_space<semaphore_mem>> -> memref<!tpu.dma_semaphore, #tpu.memory_space<semaphore_mem>>
    tpu.wait_dma2 semaphore(%186 : memref<!tpu.dma_semaphore, #tpu.memory_space<semaphore_mem>>) src(%182 : memref<128xf32, #tpu.memory_space<any>>) dst(%184 : memref<128xf32, #tpu.memory_space<vmem>>)
    %c7_i32_92 = arith.constant 7 : i32
    %c7_i32_93 = arith.constant 7 : i32
    %c0_i32_94 = arith.constant 0 : i32
    %187 = tpu.memref_slice %arg2[%66, %c0_i32_94] : memref<128x128xf32, #tpu.memory_space<any>> -> memref<1x128xf32, #tpu.memory_space<any>>
    %188 = tpu.memref_squeeze %187 : memref<1x128xf32, #tpu.memory_space<any>> -> memref<128xf32, #tpu.memory_space<any>>
    %c0_i32_95 = arith.constant 0 : i32
    %189 = tpu.memref_slice %arg4[%c7_i32_92, %c0_i32_95] : memref<16x128xf32, #tpu.memory_space<vmem>> -> memref<1x128xf32, #tpu.memory_space<vmem>>
    %190 = tpu.memref_squeeze %189 : memref<1x128xf32, #tpu.memory_space<vmem>> -> memref<128xf32, #tpu.memory_space<vmem>>
    %191 = tpu.memref_slice %arg5[%c7_i32_93] : memref<16x!tpu.dma_semaphore, #tpu.memory_space<semaphore_mem>> -> memref<1x!tpu.dma_semaphore, #tpu.memory_space<semaphore_mem>>
    %192 = tpu.memref_squeeze %191 : memref<1x!tpu.dma_semaphore, #tpu.memory_space<semaphore_mem>> -> memref<!tpu.dma_semaphore, #tpu.memory_space<semaphore_mem>>
    tpu.wait_dma2 semaphore(%192 : memref<!tpu.dma_semaphore, #tpu.memory_space<semaphore_mem>>) src(%188 : memref<128xf32, #tpu.memory_space<any>>) dst(%190 : memref<128xf32, #tpu.memory_space<vmem>>)
    %c8_i32_96 = arith.constant 8 : i32
    %c8_i32_97 = arith.constant 8 : i32
    %c0_i32_98 = arith.constant 0 : i32
    %193 = tpu.memref_slice %arg2[%75, %c0_i32_98] : memref<128x128xf32, #tpu.memory_space<any>> -> memref<1x128xf32, #tpu.memory_space<any>>
    %194 = tpu.memref_squeeze %193 : memref<1x128xf32, #tpu.memory_space<any>> -> memref<128xf32, #tpu.memory_space<any>>
    %c0_i32_99 = arith.constant 0 : i32
    %195 = tpu.memref_slice %arg4[%c8_i32_96, %c0_i32_99] : memref<16x128xf32, #tpu.memory_space<vmem>> -> memref<1x128xf32, #tpu.memory_space<vmem>>
    %196 = tpu.memref_squeeze %195 : memref<1x128xf32, #tpu.memory_space<vmem>> -> memref<128xf32, #tpu.memory_space<vmem>>
    %197 = tpu.memref_slice %arg5[%c8_i32_97] : memref<16x!tpu.dma_semaphore, #tpu.memory_space<semaphore_mem>> -> memref<1x!tpu.dma_semaphore, #tpu.memory_space<semaphore_mem>>
    %198 = tpu.memref_squeeze %197 : memref<1x!tpu.dma_semaphore, #tpu.memory_space<semaphore_mem>> -> memref<!tpu.dma_semaphore, #tpu.memory_space<semaphore_mem>>
    tpu.wait_dma2 semaphore(%198 : memref<!tpu.dma_semaphore, #tpu.memory_space<semaphore_mem>>) src(%194 : memref<128xf32, #tpu.memory_space<any>>) dst(%196 : memref<128xf32, #tpu.memory_space<vmem>>)
    %c9_i32_100 = arith.constant 9 : i32
    %c9_i32_101 = arith.constant 9 : i32
    %c0_i32_102 = arith.constant 0 : i32
    %199 = tpu.memref_slice %arg2[%84, %c0_i32_102] : memref<128x128xf32, #tpu.memory_space<any>> -> memref<1x128xf32, #tpu.memory_space<any>>
    %200 = tpu.memref_squeeze %199 : memref<1x128xf32, #tpu.memory_space<any>> -> memref<128xf32, #tpu.memory_space<any>>
    %c0_i32_103 = arith.constant 0 : i32
    %201 = tpu.memref_slice %arg4[%c9_i32_100, %c0_i32_103] : memref<16x128xf32, #tpu.memory_space<vmem>> -> memref<1x128xf32, #tpu.memory_space<vmem>>
    %202 = tpu.memref_squeeze %201 : memref<1x128xf32, #tpu.memory_space<vmem>> -> memref<128xf32, #tpu.memory_space<vmem>>
    %203 = tpu.memref_slice %arg5[%c9_i32_101] : memref<16x!tpu.dma_semaphore, #tpu.memory_space<semaphore_mem>> -> memref<1x!tpu.dma_semaphore, #tpu.memory_space<semaphore_mem>>
    %204 = tpu.memref_squeeze %203 : memref<1x!tpu.dma_semaphore, #tpu.memory_space<semaphore_mem>> -> memref<!tpu.dma_semaphore, #tpu.memory_space<semaphore_mem>>
    tpu.wait_dma2 semaphore(%204 : memref<!tpu.dma_semaphore, #tpu.memory_space<semaphore_mem>>) src(%200 : memref<128xf32, #tpu.memory_space<any>>) dst(%202 : memref<128xf32, #tpu.memory_space<vmem>>)
    %c10_i32_104 = arith.constant 10 : i32
    %c10_i32_105 = arith.constant 10 : i32
    %c0_i32_106 = arith.constant 0 : i32
    %205 = tpu.memref_slice %arg2[%93, %c0_i32_106] : memref<128x128xf32, #tpu.memory_space<any>> -> memref<1x128xf32, #tpu.memory_space<any>>
    %206 = tpu.memref_squeeze %205 : memref<1x128xf32, #tpu.memory_space<any>> -> memref<128xf32, #tpu.memory_space<any>>
    %c0_i32_107 = arith.constant 0 : i32
    %207 = tpu.memref_slice %arg4[%c10_i32_104, %c0_i32_107] : memref<16x128xf32, #tpu.memory_space<vmem>> -> memref<1x128xf32, #tpu.memory_space<vmem>>
    %208 = tpu.memref_squeeze %207 : memref<1x128xf32, #tpu.memory_space<vmem>> -> memref<128xf32, #tpu.memory_space<vmem>>
    %209 = tpu.memref_slice %arg5[%c10_i32_105] : memref<16x!tpu.dma_semaphore, #tpu.memory_space<semaphore_mem>> -> memref<1x!tpu.dma_semaphore, #tpu.memory_space<semaphore_mem>>
    %210 = tpu.memref_squeeze %209 : memref<1x!tpu.dma_semaphore, #tpu.memory_space<semaphore_mem>> -> memref<!tpu.dma_semaphore, #tpu.memory_space<semaphore_mem>>
    tpu.wait_dma2 semaphore(%210 : memref<!tpu.dma_semaphore, #tpu.memory_space<semaphore_mem>>) src(%206 : memref<128xf32, #tpu.memory_space<any>>) dst(%208 : memref<128xf32, #tpu.memory_space<vmem>>)
    %c11_i32_108 = arith.constant 11 : i32
    %c11_i32_109 = arith.constant 11 : i32
    %c0_i32_110 = arith.constant 0 : i32
    %211 = tpu.memref_slice %arg2[%102, %c0_i32_110] : memref<128x128xf32, #tpu.memory_space<any>> -> memref<1x128xf32, #tpu.memory_space<any>>
    %212 = tpu.memref_squeeze %211 : memref<1x128xf32, #tpu.memory_space<any>> -> memref<128xf32, #tpu.memory_space<any>>
    %c0_i32_111 = arith.constant 0 : i32
    %213 = tpu.memref_slice %arg4[%c11_i32_108, %c0_i32_111] : memref<16x128xf32, #tpu.memory_space<vmem>> -> memref<1x128xf32, #tpu.memory_space<vmem>>
    %214 = tpu.memref_squeeze %213 : memref<1x128xf32, #tpu.memory_space<vmem>> -> memref<128xf32, #tpu.memory_space<vmem>>
    %215 = tpu.memref_slice %arg5[%c11_i32_109] : memref<16x!tpu.dma_semaphore, #tpu.memory_space<semaphore_mem>> -> memref<1x!tpu.dma_semaphore, #tpu.memory_space<semaphore_mem>>
    %216 = tpu.memref_squeeze %215 : memref<1x!tpu.dma_semaphore, #tpu.memory_space<semaphore_mem>> -> memref<!tpu.dma_semaphore, #tpu.memory_space<semaphore_mem>>
    tpu.wait_dma2 semaphore(%216 : memref<!tpu.dma_semaphore, #tpu.memory_space<semaphore_mem>>) src(%212 : memref<128xf32, #tpu.memory_space<any>>) dst(%214 : memref<128xf32, #tpu.memory_space<vmem>>)
    %c12_i32_112 = arith.constant 12 : i32
    %c12_i32_113 = arith.constant 12 : i32
    %c0_i32_114 = arith.constant 0 : i32
    %217 = tpu.memref_slice %arg2[%111, %c0_i32_114] : memref<128x128xf32, #tpu.memory_space<any>> -> memref<1x128xf32, #tpu.memory_space<any>>
    %218 = tpu.memref_squeeze %217 : memref<1x128xf32, #tpu.memory_space<any>> -> memref<128xf32, #tpu.memory_space<any>>
    %c0_i32_115 = arith.constant 0 : i32
    %219 = tpu.memref_slice %arg4[%c12_i32_112, %c0_i32_115] : memref<16x128xf32, #tpu.memory_space<vmem>> -> memref<1x128xf32, #tpu.memory_space<vmem>>
    %220 = tpu.memref_squeeze %219 : memref<1x128xf32, #tpu.memory_space<vmem>> -> memref<128xf32, #tpu.memory_space<vmem>>
    %221 = tpu.memref_slice %arg5[%c12_i32_113] : memref<16x!tpu.dma_semaphore, #tpu.memory_space<semaphore_mem>> -> memref<1x!tpu.dma_semaphore, #tpu.memory_space<semaphore_mem>>
    %222 = tpu.memref_squeeze %221 : memref<1x!tpu.dma_semaphore, #tpu.memory_space<semaphore_mem>> -> memref<!tpu.dma_semaphore, #tpu.memory_space<semaphore_mem>>
    tpu.wait_dma2 semaphore(%222 : memref<!tpu.dma_semaphore, #tpu.memory_space<semaphore_mem>>) src(%218 : memref<128xf32, #tpu.memory_space<any>>) dst(%220 : memref<128xf32, #tpu.memory_space<vmem>>)
    %c13_i32_116 = arith.constant 13 : i32
    %c13_i32_117 = arith.constant 13 : i32
    %c0_i32_118 = arith.constant 0 : i32
    %223 = tpu.memref_slice %arg2[%120, %c0_i32_118] : memref<128x128xf32, #tpu.memory_space<any>> -> memref<1x128xf32, #tpu.memory_space<any>>
    %224 = tpu.memref_squeeze %223 : memref<1x128xf32, #tpu.memory_space<any>> -> memref<128xf32, #tpu.memory_space<any>>
    %c0_i32_119 = arith.constant 0 : i32
    %225 = tpu.memref_slice %arg4[%c13_i32_116, %c0_i32_119] : memref<16x128xf32, #tpu.memory_space<vmem>> -> memref<1x128xf32, #tpu.memory_space<vmem>>
    %226 = tpu.memref_squeeze %225 : memref<1x128xf32, #tpu.memory_space<vmem>> -> memref<128xf32, #tpu.memory_space<vmem>>
    %227 = tpu.memref_slice %arg5[%c13_i32_117] : memref<16x!tpu.dma_semaphore, #tpu.memory_space<semaphore_mem>> -> memref<1x!tpu.dma_semaphore, #tpu.memory_space<semaphore_mem>>
    %228 = tpu.memref_squeeze %227 : memref<1x!tpu.dma_semaphore, #tpu.memory_space<semaphore_mem>> -> memref<!tpu.dma_semaphore, #tpu.memory_space<semaphore_mem>>
    tpu.wait_dma2 semaphore(%228 : memref<!tpu.dma_semaphore, #tpu.memory_space<semaphore_mem>>) src(%224 : memref<128xf32, #tpu.memory_space<any>>) dst(%226 : memref<128xf32, #tpu.memory_space<vmem>>)
    %c14_i32_120 = arith.constant 14 : i32
    %c14_i32_121 = arith.constant 14 : i32
    %c0_i32_122 = arith.constant 0 : i32
    %229 = tpu.memref_slice %arg2[%129, %c0_i32_122] : memref<128x128xf32, #tpu.memory_space<any>> -> memref<1x128xf32, #tpu.memory_space<any>>
    %230 = tpu.memref_squeeze %229 : memref<1x128xf32, #tpu.memory_space<any>> -> memref<128xf32, #tpu.memory_space<any>>
    %c0_i32_123 = arith.constant 0 : i32
    %231 = tpu.memref_slice %arg4[%c14_i32_120, %c0_i32_123] : memref<16x128xf32, #tpu.memory_space<vmem>> -> memref<1x128xf32, #tpu.memory_space<vmem>>
    %232 = tpu.memref_squeeze %231 : memref<1x128xf32, #tpu.memory_space<vmem>> -> memref<128xf32, #tpu.memory_space<vmem>>
    %233 = tpu.memref_slice %arg5[%c14_i32_121] : memref<16x!tpu.dma_semaphore, #tpu.memory_space<semaphore_mem>> -> memref<1x!tpu.dma_semaphore, #tpu.memory_space<semaphore_mem>>
    %234 = tpu.memref_squeeze %233 : memref<1x!tpu.dma_semaphore, #tpu.memory_space<semaphore_mem>> -> memref<!tpu.dma_semaphore, #tpu.memory_space<semaphore_mem>>
    tpu.wait_dma2 semaphore(%234 : memref<!tpu.dma_semaphore, #tpu.memory_space<semaphore_mem>>) src(%230 : memref<128xf32, #tpu.memory_space<any>>) dst(%232 : memref<128xf32, #tpu.memory_space<vmem>>)
    %c15_i32_124 = arith.constant 15 : i32
    %c15_i32_125 = arith.constant 15 : i32
    %c0_i32_126 = arith.constant 0 : i32
    %235 = tpu.memref_slice %arg2[%138, %c0_i32_126] : memref<128x128xf32, #tpu.memory_space<any>> -> memref<1x128xf32, #tpu.memory_space<any>>
    %236 = tpu.memref_squeeze %235 : memref<1x128xf32, #tpu.memory_space<any>> -> memref<128xf32, #tpu.memory_space<any>>
    %c0_i32_127 = arith.constant 0 : i32
    %237 = tpu.memref_slice %arg4[%c15_i32_124, %c0_i32_127] : memref<16x128xf32, #tpu.memory_space<vmem>> -> memref<1x128xf32, #tpu.memory_space<vmem>>
    %238 = tpu.memref_squeeze %237 : memref<1x128xf32, #tpu.memory_space<vmem>> -> memref<128xf32, #tpu.memory_space<vmem>>
    %239 = tpu.memref_slice %arg5[%c15_i32_125] : memref<16x!tpu.dma_semaphore, #tpu.memory_space<semaphore_mem>> -> memref<1x!tpu.dma_semaphore, #tpu.memory_space<semaphore_mem>>
    %240 = tpu.memref_squeeze %239 : memref<1x!tpu.dma_semaphore, #tpu.memory_space<semaphore_mem>> -> memref<!tpu.dma_semaphore, #tpu.memory_space<semaphore_mem>>
    tpu.wait_dma2 semaphore(%240 : memref<!tpu.dma_semaphore, #tpu.memory_space<semaphore_mem>>) src(%236 : memref<128xf32, #tpu.memory_space<any>>) dst(%238 : memref<128xf32, #tpu.memory_space<vmem>>)
    %c0 = arith.constant 0 : index
    %c0_128 = arith.constant 0 : index
    %241 = vector.load %arg4[%c0, %c0_128] : memref<16x128xf32, #tpu.memory_space<vmem>>, vector<16x128xf32>
    %c0_129 = arith.constant 0 : index
    %c0_130 = arith.constant 0 : index
    %242 = vector.load %arg3[%c0_129, %c0_130] : memref<16x128xf32, #tpu.memory_space<vmem>>, vector<16x128xf32>
    tpu.vector_store %arg3[%c0_129, %c0_130], %241 {strides = array<i32>} : memref<16x128xf32, #tpu.memory_space<vmem>>, vector<16x128xf32>,
    return
  }
  func.func @transform_1(%arg0: i32, %arg1: memref<16xi32, #tpu.memory_space<smem>>) -> (i32, i32) {
    %c0_i32 = arith.constant 0 : i32
    %c0_i32_0 = arith.constant 0 : i32
    return %arg0, %c0_i32 : i32, i32
  }
}

</mosaic_0001>

<bundles_post_ra>
// kernel: tpu_custom_call.1
= control target key start
LH: loop header
LB: loop body
LE: loop exit
PB: predicated region body
PF: predicated region fallthrough
CT: control target
= control target key end

     0   :  { %s990_s12 = smov [#allocation5]   ;;  %s1202_s0 = inlined_call_operand.hbm [shape: s32[16], index: 0, kind: input, shape index: {}]   ;;  %s1203_s1 = inlined_call_operand.hbm [shape: f32[128,128], index: 1, kind: input, shape index: {}]   ;;  %s1204_s2 = inlined_call_operand.hbm [shape: f32[16,128], index: 2, kind: output, shape index: {}]  }
   0x1   :  { %s8_s11 = sshll.u32 %s1202_s0, 4  ;;  %s9_s11 = int_to_ptr.hbm [resolvable:$true] %s8_s11 }
   0x2   :  { %11 = dma.hbm_to_smem %s9_s11, 16, %s990_s12, [#allocation4] }
   0x3   :  { %954 = dma.done.wait [#allocation4], 16 }
   0x4   :  { %955 = vsyncadd [#allocation4], 4294967280 }
   0x5   :  { %14 = sfence }
   0x6   :  { %15 = vsyncpa [#allocation7], 0  ;;  %s17_s13 = sld [smem:[#allocation5]]  ;;  %s991_s14 = smov [#allocation2]  }
   0x7   :  { %s28_s15 = sshll.u32 %s991_s14, 4  ;;  %s483_s16 = sld [smem:[#allocation5 + $0x1]]  ;;  %s29_s15 = int_to_ptr.vmem [resolvable:$true] %s28_s15 }
   0x8   :  { %s992_s17 = smov [#allocation2 + $0x1]   ;;  %s1030_s19 = sld [smem:[#allocation5 + $0x2]] }
   0x9   :  { %s1028_s18 = sshll.u32 %s992_s17, 4  ;;  %s993_s0 = smov [#allocation2 + $0x2]   ;;  %s47_s18 = int_to_ptr.vmem [resolvable:$true] %s1028_s18 }
   0xa   :  { %s1033_s20 = sshll.u32 %s993_s0, 4  ;;  %s1035_s21 = sld [smem:[#allocation5 + $0x3]]  ;;  %s65_s20 = int_to_ptr.vmem [resolvable:$true] %s1033_s20 }
   0xb   :  { %s1047_s6 = scalar_lea.hbm %s1203_s1, 128 }
   0xc   :  { %s18_s24 = scalar_lea.hbm %s1203_s1, %s17_s13 }
   0xd   :  { %s26_s25 = sshll.u32 %s18_s24, 4  ;;  %s34_s28 = scalar_lea.hbm %s1203_s1, %s483_s16  ;;  %s27_s25 = int_to_ptr.hbm [resolvable:$true] %s26_s25 }
   0xe   :  { %s44_s29 = sshll.u32 %s34_s28, 4  ;;  %s546_s30 = sshra.s32 %s27_s25, 4  ;;  %s547_s30 = int_to_ptr.hbm [resolvable:$true] %s546_s30  ;;  %s45_s29 = int_to_ptr.hbm [resolvable:$true] %s44_s29 }
   0xf   :  { %s548_s3 = scalar_lea.hbm %s547_s30, 1  ;;  %p551_p1 = scmp.lt.s32.totalorder %s547_s30, %s1203_s1 }
  0x10   :  { %p549_p0 = scmp.ne.s32.totalorder %s547_s30, %s548_s3  ;;  %p552_p2 = scmp.lt.s32.totalorder %s1047_s6, %s548_s3 }
  0x12   :  { %p553_p3 = por %p552_p2, %p551_p1 }
  0x14   :  { %p554_p4 = pnand %p553_p3, %p549_p0 }
  0x16   :  { %557 = shalt.err (!%p554_p4)  }
  0x17   :  { %31 = dma.hbm_to_vmem [thread:$0]  %s27_s25, 16, %s29_s15, [#allocation3] }
  0x18   :  { %s52_s11 = scalar_lea.hbm %s1203_s1, %s1030_s19  ;;  %s570_s12 = sshra.s32 %s45_s29, 4  ;;  %s571_s12 = int_to_ptr.hbm [resolvable:$true] %s570_s12 }
  0x19   :  { %s572_s13 = scalar_lea.hbm %s571_s12, 1  ;;  %p575_p6 = scmp.lt.s32.totalorder %s571_s12, %s1203_s1 }
  0x1a   :  { %p573_p5 = scmp.ne.s32.totalorder %s571_s12, %s572_s13  ;;  %p576_p7 = scmp.lt.s32.totalorder %s1047_s6, %s572_s13 }
  0x1c   :  { %p577_p8 = por %p576_p7, %p575_p6 }
  0x1e   :  { %p578_p9 = pnand %p577_p8, %p573_p5 }
  0x20   :  { %581 = shalt.err (!%p578_p9)  }
  0x21   :  { %49 = dma.hbm_to_vmem [thread:$0]  %s45_s29, 16, %s47_s18, [#allocation3 + $0x1] }
  0x22   :  { %s62_s15 = sshll.u32 %s52_s11, 4  ;;  %s70_s0 = scalar_lea.hbm %s1203_s1, %s1035_s21  ;;  %s63_s15 = int_to_ptr.hbm [resolvable:$true] %s62_s15 }
  0x23   :  { %s80_s22 = sshll.u32 %s70_s0, 4  ;;  %s594_s23 = sshra.s32 %s63_s15, 4  ;;  %s595_s23 = int_to_ptr.hbm [resolvable:$true] %s594_s23  ;;  %s81_s22 = int_to_ptr.hbm [resolvable:$true] %s80_s22 }
  0x24   :  { %s596_s24 = scalar_lea.hbm %s595_s23, 1  ;;  %p599_p11 = scmp.lt.s32.totalorder %s595_s23, %s1203_s1 }
  0x25   :  { %p597_p10 = scmp.ne.s32.totalorder %s595_s23, %s596_s24  ;;  %p600_p12 = scmp.lt.s32.totalorder %s1047_s6, %s596_s24 }
  0x27   :  { %p601_p13 = por %p600_p12, %p599_p11 }
  0x29   :  { %p602_p0 = pnand %p601_p13, %p597_p10 }
  0x2b   :  { %605 = shalt.err (!%p602_p0)  }
  0x2c   :  { %67 = dma.hbm_to_vmem [thread:$0]  %s63_s15, 16, %s65_s20, [#allocation3 + $0x2] }
  0x2d   :  { %s994_s18 = smov [#allocation2 + $0x3]   ;;  %s486_s27 = sld [smem:[#allocation5 + $0x4]] }
  0x2e   :  { %s82_s21 = sshll.u32 %s994_s18, 4  ;;  %s618_s28 = sshra.s32 %s81_s22, 4  ;;  %s83_s21 = int_to_ptr.vmem [resolvable:$true] %s82_s21  ;;  %s619_s28 = int_to_ptr.hbm [resolvable:$true] %s618_s28 }
  0x2f   :  { %s620_s29 = scalar_lea.hbm %s619_s28, 1  ;;  %p623_p2 = scmp.lt.s32.totalorder %s619_s28, %s1203_s1 }
  0x30   :  { %p621_p1 = scmp.ne.s32.totalorder %s619_s28, %s620_s29  ;;  %p624_p3 = scmp.lt.s32.totalorder %s1047_s6, %s620_s29 }
  0x32   :  { %p625_p4 = por %p624_p3, %p623_p2 }
  0x34   :  { %p626_p5 = pnand %p625_p4, %p621_p1 }
  0x36   :  { %629 = shalt.err (!%p626_p5)  }
  0x37   :  { %85 = dma.hbm_to_vmem [thread:$0]  %s81_s22, 16, %s83_s21, [#allocation3 + $0x3] }
  0x38   :  { %s995_s4 = smov [#allocation2 + $0x4]   ;;  %s487_s5 = sld [smem:[#allocation5 + $0x5]] }
  0x39   :  { %s100_s20 = sshll.u32 %s995_s4, 4  ;;  %s996_s7 = smov [#allocation2 + $0x5]   ;;  %s101_s20 = int_to_ptr.vmem [resolvable:$true] %s100_s20 }
  0x3a   :  { %s1077_s8 = sshll.u32 %s996_s7, 4  ;;  %s488_s9 = sld [smem:[#allocation5 + $0x6]]  ;;  %s119_s8 = int_to_ptr.vmem [resolvable:$true] %s1077_s8 }
  0x3b   :  { %s88_s12 = scalar_lea.hbm %s1203_s1, %s486_s27  ;;  %s997_s14 = smov [#allocation2 + $0x6]  }
  0x3c   :  { %s98_s13 = sshll.u32 %s88_s12, 4  ;;  %s1083_s16 = sshll.u32 %s997_s14, 4  ;;  %s99_s13 = int_to_ptr.hbm [resolvable:$true] %s98_s13  ;;  %s137_s16 = int_to_ptr.vmem [resolvable:$true] %s1083_s16 }
  0x3d   :  { %s642_s15 = sshra.s32 %s99_s13, 4  ;;  %s643_s15 = int_to_ptr.hbm [resolvable:$true] %s642_s15 }
  0x3e   :  { %s644_s17 = scalar_lea.hbm %s643_s15, 1  ;;  %p647_p7 = scmp.lt.s32.totalorder %s643_s15, %s1203_s1 }
  0x3f   :  { %p645_p6 = scmp.ne.s32.totalorder %s643_s15, %s644_s17  ;;  %p648_p8 = scmp.lt.s32.totalorder %s1047_s6, %s644_s17 }
  0x41   :  { %p649_p9 = por %p648_p8, %p647_p7 }
  0x43   :  { %p650_p10 = pnand %p649_p9, %p645_p6 }
  0x45   :  { %653 = shalt.err (!%p650_p10)  }
  0x46   :  { %103 = dma.hbm_to_vmem [thread:$0]  %s99_s13, 16, %s101_s20, [#allocation3 + $0x4] }
  0x47   :  { %s106_s24 = scalar_lea.hbm %s1203_s1, %s487_s5  ;;  %s124_s21 = scalar_lea.hbm %s1203_s1, %s488_s9 }
  0x48   :  { %s116_s25 = sshll.u32 %s106_s24, 4  ;;  %s134_s27 = sshll.u32 %s124_s21, 4  ;;  %s117_s25 = int_to_ptr.hbm [resolvable:$true] %s116_s25  ;;  %s135_s27 = int_to_ptr.hbm [resolvable:$true] %s134_s27 }
  0x49   :  { %s666_s28 = sshra.s32 %s117_s25, 4  ;;  %s667_s28 = int_to_ptr.hbm [resolvable:$true] %s666_s28 }
  0x4a   :  { %s668_s29 = scalar_lea.hbm %s667_s28, 1  ;;  %p671_p12 = scmp.lt.s32.totalorder %s667_s28, %s1203_s1 }
  0x4b   :  { %p669_p11 = scmp.ne.s32.totalorder %s667_s28, %s668_s29  ;;  %p672_p13 = scmp.lt.s32.totalorder %s1047_s6, %s668_s29 }
  0x4d   :  { %p673_p0 = por %p672_p13, %p671_p12 }
  0x4f   :  { %p674_p1 = pnand %p673_p0, %p669_p11 }
  0x51   :  { %677 = shalt.err (!%p674_p1)  }
  0x52   :  { %121 = dma.hbm_to_vmem [thread:$0]  %s117_s25, 16, %s119_s8, [#allocation3 + $0x5] }
  0x53   :  { %s489_s4 = sld [smem:[#allocation5 + $0x7]]  ;;  %s690_s20 = sshra.s32 %s135_s27, 4  ;;  %s691_s20 = int_to_ptr.hbm [resolvable:$true] %s690_s20 }
  0x54   :  { %s692_s5 = scalar_lea.hbm %s691_s20, 1  ;;  %p695_p3 = scmp.lt.s32.totalorder %s691_s20, %s1203_s1 }
  0x55   :  { %p693_p2 = scmp.ne.s32.totalorder %s691_s20, %s692_s5  ;;  %p696_p4 = scmp.lt.s32.totalorder %s1047_s6, %s692_s5 }
  0x57   :  { %p697_p5 = por %p696_p4, %p695_p3 }
  0x59   :  { %p698_p6 = pnand %p697_p5, %p693_p2 }
  0x5b   :  { %701 = shalt.err (!%p698_p6)  }
  0x5c   :  { %139 = dma.hbm_to_vmem [thread:$0]  %s135_s27, 16, %s137_s16, [#allocation3 + $0x6] }
  0x5d   :  { %s490_s10 = sld [smem:[#allocation5 + $0x8]]  ;;  %s998_s11 = smov [#allocation2 + $0x7]  }
  0x5e   :  { %s154_s12 = sshll.u32 %s998_s11, 4  ;;  %s999_s8 = smov [#allocation2 + $0x8]   ;;  %s155_s12 = int_to_ptr.vmem [resolvable:$true] %s154_s12 }
  0x5f   :  { %s1106_s13 = sshll.u32 %s999_s8, 4  ;;  %s1109_s14 = sld [smem:[#allocation5 + $0x9]]  ;;  %s173_s13 = int_to_ptr.vmem [resolvable:$true] %s1106_s13 }
  0x60   :  { %s142_s19 = scalar_lea.hbm %s1203_s1, %s489_s4  ;;  %s1000_s22 = smov [#allocation2 + $0x9]  }
  0x61   :  { %s152_s0 = sshll.u32 %s142_s19, 4  ;;  %s1114_s23 = sshll.u32 %s1000_s22, 4  ;;  %s153_s0 = int_to_ptr.hbm [resolvable:$true] %s152_s0  ;;  %s191_s23 = int_to_ptr.vmem [resolvable:$true] %s1114_s23 }
  0x62   :  { %s714_s26 = sshra.s32 %s153_s0, 4  ;;  %s715_s26 = int_to_ptr.hbm [resolvable:$true] %s714_s26 }
  0x63   :  { %s160_s25 = scalar_lea.hbm %s1203_s1, %s490_s10  ;;  %s716_s18 = scalar_lea.hbm %s715_s26, 1 }
  0x64   :  { %p717_p7 = scmp.ne.s32.totalorder %s715_s26, %s716_s18  ;;  %p719_p8 = scmp.lt.s32.totalorder %s715_s26, %s1203_s1 }
  0x65   :  { %p720_p9 = scmp.lt.s32.totalorder %s1047_s6, %s716_s18 }
  0x67   :  { %p721_p10 = por %p720_p9, %p719_p8 }
  0x69   :  { %p722_p11 = pnand %p721_p10, %p717_p7 }
  0x6b   :  { %725 = shalt.err (!%p722_p11)  }
  0x6c   :  { %157 = dma.hbm_to_vmem [thread:$0]  %s153_s0, 16, %s155_s12, [#allocation3 + $0x7] }
  0x6d   :  { %s170_s28 = sshll.u32 %s160_s25, 4  ;;  %s178_s3 = scalar_lea.hbm %s1203_s1, %s1109_s14  ;;  %s171_s28 = int_to_ptr.hbm [resolvable:$true] %s170_s28 }
  0x6e   :  { %s738_s4 = sshra.s32 %s171_s28, 4  ;;  %s739_s4 = int_to_ptr.hbm [resolvable:$true] %s738_s4 }
  0x6f   :  { %s740_s20 = scalar_lea.hbm %s739_s4, 1  ;;  %p743_p13 = scmp.lt.s32.totalorder %s739_s4, %s1203_s1 }
  0x70   :  { %p741_p12 = scmp.ne.s32.totalorder %s739_s4, %s740_s20  ;;  %p744_p0 = scmp.lt.s32.totalorder %s1047_s6, %s740_s20 }
  0x72   :  { %p745_p1 = por %p744_p0, %p743_p13 }
  0x74   :  { %p746_p2 = pnand %p745_p1, %p741_p12 }
  0x76   :  { %749 = shalt.err (!%p746_p2)  }
  0x77   :  { %175 = dma.hbm_to_vmem [thread:$0]  %s171_s28, 16, %s173_s13, [#allocation3 + $0x8] }
  0x78   :  { %s188_s9 = sshll.u32 %s178_s3, 4  ;;  %s492_s10 = sld [smem:[#allocation5 + $0xa]]  ;;  %s189_s9 = int_to_ptr.hbm [resolvable:$true] %s188_s9 }
  0x79   :  { %s762_s11 = sshra.s32 %s189_s9, 4  ;;  %s763_s11 = int_to_ptr.hbm [resolvable:$true] %s762_s11 }
  0x7a   :  { %s764_s12 = scalar_lea.hbm %s763_s11, 1  ;;  %p767_p4 = scmp.lt.s32.totalorder %s763_s11, %s1203_s1 }
  0x7b   :  { %p765_p3 = scmp.ne.s32.totalorder %s763_s11, %s764_s12  ;;  %p768_p5 = scmp.lt.s32.totalorder %s1047_s6, %s764_s12 }
  0x7d   :  { %p769_p6 = por %p768_p5, %p767_p4 }
  0x7f   :  { %p770_p7 = pnand %p769_p6, %p765_p3 }
  0x81   :  { %773 = shalt.err (!%p770_p7)  }
  0x82   :  { %193 = dma.hbm_to_vmem [thread:$0]  %s189_s9, 16, %s191_s23, [#allocation3 + $0x9] }
  0x83   :  { %s1001_s15 = smov [#allocation2 + $0xa]   ;;  %s493_s19 = sld [smem:[#allocation5 + $0xb]] }
  0x84   :  { %s208_s17 = sshll.u32 %s1001_s15, 4  ;;  %s1002_s13 = smov [#allocation2 + $0xb]   ;;  %s209_s17 = int_to_ptr.vmem [resolvable:$true] %s208_s17 }
  0x85   :  { %s1138_s0 = sshll.u32 %s1002_s13, 4  ;;  %s494_s22 = sld [smem:[#allocation5 + $0xc]]  ;;  %s227_s0 = int_to_ptr.vmem [resolvable:$true] %s1138_s0 }
  0x86   :  { %s196_s25 = scalar_lea.hbm %s1203_s1, %s492_s10  ;;  %s1003_s18 = smov [#allocation2 + $0xc]  }
  0x87   :  { %s206_s26 = sshll.u32 %s196_s25, 4  ;;  %s1144_s21 = sshll.u32 %s1003_s18, 4  ;;  %s207_s26 = int_to_ptr.hbm [resolvable:$true] %s206_s26  ;;  %s245_s21 = int_to_ptr.vmem [resolvable:$true] %s1144_s21 }
  0x88   :  { %s786_s23 = sshra.s32 %s207_s26, 4  ;;  %s787_s23 = int_to_ptr.hbm [resolvable:$true] %s786_s23 }
  0x89   :  { %s788_s27 = scalar_lea.hbm %s787_s23, 1  ;;  %p791_p9 = scmp.lt.s32.totalorder %s787_s23, %s1203_s1 }
  0x8a   :  { %p789_p8 = scmp.ne.s32.totalorder %s787_s23, %s788_s27  ;;  %p792_p10 = scmp.lt.s32.totalorder %s1047_s6, %s788_s27 }
  0x8c   :  { %p793_p11 = por %p792_p10, %p791_p9 }
  0x8e   :  { %p794_p12 = pnand %p793_p11, %p789_p8 }
  0x90   :  { %797 = shalt.err (!%p794_p12)  }
  0x91   :  { %211 = dma.hbm_to_vmem [thread:$0]  %s207_s26, 16, %s209_s17, [#allocation3 + $0xa] }
  0x92   :  { %s214_s4 = scalar_lea.hbm %s1203_s1, %s493_s19  ;;  %s232_s9 = scalar_lea.hbm %s1203_s1, %s494_s22 }
  0x93   :  { %s224_s20 = sshll.u32 %s214_s4, 4  ;;  %s242_s10 = sshll.u32 %s232_s9, 4  ;;  %s225_s20 = int_to_ptr.hbm [resolvable:$true] %s224_s20  ;;  %s243_s10 = int_to_ptr.hbm [resolvable:$true] %s242_s10 }
  0x94   :  { %s810_s11 = sshra.s32 %s225_s20, 4  ;;  %s811_s11 = int_to_ptr.hbm [resolvable:$true] %s810_s11 }
  0x95   :  { %s812_s12 = scalar_lea.hbm %s811_s11, 1  ;;  %p815_p0 = scmp.lt.s32.totalorder %s811_s11, %s1203_s1 }
  0x96   :  { %p813_p13 = scmp.ne.s32.totalorder %s811_s11, %s812_s12  ;;  %p816_p1 = scmp.lt.s32.totalorder %s1047_s6, %s812_s12 }
  0x98   :  { %p817_p2 = por %p816_p1, %p815_p0 }
  0x9a   :  { %p818_p3 = pnand %p817_p2, %p813_p13 }
  0x9c   :  { %821 = shalt.err (!%p818_p3)  }
  0x9d   :  { %229 = dma.hbm_to_vmem [thread:$0]  %s225_s20, 16, %s227_s0, [#allocation3 + $0xb] }
  0x9e   :  { %s495_s15 = sld [smem:[#allocation5 + $0xd]]  ;;  %s834_s17 = sshra.s32 %s243_s10, 4  ;;  %s835_s17 = int_to_ptr.hbm [resolvable:$true] %s834_s17 }
  0x9f   :  { %s836_s19 = scalar_lea.hbm %s835_s17, 1  ;;  %p839_p5 = scmp.lt.s32.totalorder %s835_s17, %s1203_s1 }
  0xa0   :  { %p837_p4 = scmp.ne.s32.totalorder %s835_s17, %s836_s19  ;;  %p840_p6 = scmp.lt.s32.totalorder %s1047_s6, %s836_s19 }
  0xa2   :  { %p841_p7 = por %p840_p6, %p839_p5 }
  0xa4   :  { %p842_p8 = pnand %p841_p7, %p837_p4 }
  0xa6   :  { %845 = shalt.err (!%p842_p8)  }
  0xa7   :  { %247 = dma.hbm_to_vmem [thread:$0]  %s243_s10, 16, %s245_s21, [#allocation3 + $0xc] }
  0xa8   :  { %s496_s16 = sld [smem:[#allocation5 + $0xe]]  ;;  %s1004_s24 = smov [#allocation2 + $0xd]  }
  0xa9   :  { %s262_s25 = sshll.u32 %s1004_s24, 4  ;;  %s1005_s0 = smov [#allocation2 + $0xe]   ;;  %s263_s25 = int_to_ptr.vmem [resolvable:$true] %s262_s25 }
  0xaa   :  { %s1167_s26 = sshll.u32 %s1005_s0, 4  ;;  %s1170_s18 = sld [smem:[#allocation5 + $0xf]]  ;;  %s281_s26 = int_to_ptr.vmem [resolvable:$true] %s1167_s26 }
  0xab   :  { %s250_s28 = scalar_lea.hbm %s1203_s1, %s495_s15  ;;  %s1006_s30 = smov [#allocation2 + $0xf]  }
  0xac   :  { %s260_s29 = sshll.u32 %s250_s28, 4  ;;  %s1175_s3 = sshll.u32 %s1006_s30, 4  ;;  %s261_s29 = int_to_ptr.hbm [resolvable:$true] %s260_s29  ;;  %s299_s3 = int_to_ptr.vmem [resolvable:$true] %s1175_s3 }
  0xad   :  { %s858_s5 = sshra.s32 %s261_s29, 4  ;;  %s859_s5 = int_to_ptr.hbm [resolvable:$true] %s858_s5 }
  0xae   :  { %s268_s20 = scalar_lea.hbm %s1203_s1, %s496_s16  ;;  %s860_s7 = scalar_lea.hbm %s859_s5, 1 }
  0xaf   :  { %p861_p9 = scmp.ne.s32.totalorder %s859_s5, %s860_s7  ;;  %p863_p10 = scmp.lt.s32.totalorder %s859_s5, %s1203_s1 }
  0xb0   :  { %p864_p11 = scmp.lt.s32.totalorder %s1047_s6, %s860_s7 }
  0xb2   :  { %p865_p12 = por %p864_p11, %p863_p10 }
  0xb4   :  { %p866_p13 = pnand %p865_p12, %p861_p9 }
  0xb6   :  { %869 = shalt.err (!%p866_p13)  }
  0xb7   :  { %265 = dma.hbm_to_vmem [thread:$0]  %s261_s29, 16, %s263_s25, [#allocation3 + $0xd] }
  0xb8   :  { %s278_s11 = sshll.u32 %s268_s20, 4  ;;  %s286_s14 = scalar_lea.hbm %s1203_s1, %s1170_s18  ;;  %s279_s11 = int_to_ptr.hbm [resolvable:$true] %s278_s11 }
  0xb9   :  { %s882_s15 = sshra.s32 %s279_s11, 4  ;;  %s883_s15 = int_to_ptr.hbm [resolvable:$true] %s882_s15 }
  0xba   :  { %s884_s17 = scalar_lea.hbm %s883_s15, 1  ;;  %p887_p1 = scmp.lt.s32.totalorder %s883_s15, %s1203_s1 }
  0xbb   :  { %p885_p0 = scmp.ne.s32.totalorder %s883_s15, %s884_s17  ;;  %p888_p2 = scmp.lt.s32.totalorder %s1047_s6, %s884_s17 }
  0xbd   :  { %p889_p3 = por %p888_p2, %p887_p1 }
  0xbf   :  { %p890_p4 = pnand %p889_p3, %p885_p0 }
  0xc1   :  { %893 = shalt.err (!%p890_p4)  }
  0xc2   :  { %283 = dma.hbm_to_vmem [thread:$0]  %s279_s11, 16, %s281_s26, [#allocation3 + $0xe] }
  0xc3   :  { %s296_s22 = sshll.u32 %s286_s14, 4  ;;  %s297_s22 = int_to_ptr.hbm [resolvable:$true] %s296_s22 }
  0xc4   :  { %s906_s16 = sshra.s32 %s297_s22, 4  ;;  %s907_s16 = int_to_ptr.hbm [resolvable:$true] %s906_s16 }
  0xc5   :  { %s908_s24 = scalar_lea.hbm %s907_s16, 1  ;;  %p911_p6 = scmp.lt.s32.totalorder %s907_s16, %s1203_s1 }
  0xc6   :  { %p909_p5 = scmp.ne.s32.totalorder %s907_s16, %s908_s24  ;;  %p912_p7 = scmp.lt.s32.totalorder %s1047_s6, %s908_s24 }
  0xc8   :  { %p913_p8 = por %p912_p7, %p911_p6 }
  0xca   :  { %p914_p9 = pnand %p913_p8, %p909_p5 }
  0xcc   :  { %917 = shalt.err (!%p914_p9)  }
  0xcd   :  { %301 = dma.hbm_to_vmem [thread:$0]  %s297_s22, 16, %s299_s3, [#allocation3 + $0xf] }
  0xce   :  { %956 = dma.done.wait [#allocation3], 16 }
  0xcf   :  { %957 = vsyncadd [#allocation3], 4294967280 }
  0xd0   :  { %958 = dma.done.wait [#allocation3 + $0x1], 16 }
  0xd1   :  { %959 = vsyncadd [#allocation3 + $0x1], 4294967280 }
  0xd2   :  { %960 = dma.done.wait [#allocation3 + $0x2], 16 }
  0xd3   :  { %961 = vsyncadd [#allocation3 + $0x2], 4294967280 }
  0xd4   :  { %962 = dma.done.wait [#allocation3 + $0x3], 16 }
  0xd5   :  { %963 = vsyncadd [#allocation3 + $0x3], 4294967280 }
  0xd6   :  { %964 = dma.done.wait [#allocation3 + $0x4], 16 }
  0xd7   :  { %965 = vsyncadd [#allocation3 + $0x4], 4294967280 }
  0xd8   :  { %966 = dma.done.wait [#allocation3 + $0x5], 16 }
  0xd9   :  { %967 = vsyncadd [#allocation3 + $0x5], 4294967280 }
  0xda   :  { %968 = dma.done.wait [#allocation3 + $0x6], 16 }
  0xdb   :  { %969 = vsyncadd [#allocation3 + $0x6], 4294967280 }
  0xdc   :  { %970 = dma.done.wait [#allocation3 + $0x7], 16 }
  0xdd   :  { %971 = vsyncadd [#allocation3 + $0x7], 4294967280 }
  0xde   :  { %972 = dma.done.wait [#allocation3 + $0x8], 16 }
  0xdf   :  { %973 = vsyncadd [#allocation3 + $0x8], 4294967280 }
  0xe0   :  { %974 = dma.done.wait [#allocation3 + $0x9], 16 }
  0xe1   :  { %975 = vsyncadd [#allocation3 + $0x9], 4294967280 }
  0xe2   :  { %976 = dma.done.wait [#allocation3 + $0xa], 16 }
  0xe3   :  { %977 = vsyncadd [#allocation3 + $0xa], 4294967280 }
  0xe4   :  { %978 = dma.done.wait [#allocation3 + $0xb], 16 }
  0xe5   :  { %979 = vsyncadd [#allocation3 + $0xb], 4294967280 }
  0xe6   :  { %980 = dma.done.wait [#allocation3 + $0xc], 16 }
  0xe7   :  { %981 = vsyncadd [#allocation3 + $0xc], 4294967280 }
  0xe8   :  { %982 = dma.done.wait [#allocation3 + $0xd], 16 }
  0xe9   :  { %983 = vsyncadd [#allocation3 + $0xd], 4294967280 }
  0xea   :  { %984 = dma.done.wait [#allocation3 + $0xe], 16 }
  0xeb   :  { %985 = vsyncadd [#allocation3 + $0xe], 4294967280 }
  0xec   :  { %986 = dma.done.wait [#allocation3 + $0xf], 16 }
  0xed   :  { %987 = vsyncadd [#allocation3 + $0xf], 4294967280  ;;  %s1007_s1 = smov [#allocation6]   ;;  %s344_s23 = sshll.u32 %s1204_s2, 4  ;;  %v334_v0 = vld [vmem:[#allocation2] sm:$0xff]  ;;  %v335_v1 = vld [vmem:[#allocation2 + $0x8] sm:$0xff]  ;;  %s345_s23 = int_to_ptr.hbm [resolvable:$true] %s344_s23 }
  0xee   :  { %s342_s6 = sshll.u32 %s1007_s1, 4  ;;  %336 = vst [vmem:[#allocation6] sm:$0xff] %v334_v0  ;;  %s1008_s27 = smov 128   ;;  %s343_s6 = int_to_ptr.vmem [resolvable:$true] %s342_s6 }
  0xef   :  { %337 = vst [vmem:[#allocation6 + $0x8] sm:$0xff] %v335_v1  ;;  %s1009_s28 = smov 8  }
  0xf0   :  { %350 = dma.vmem_to_hbm [thread:$0]  %s343_s6, 256, %s345_s23, [#allocation7], %s1008_s27, %s1008_s27, %s1009_s28  }
  0xf1   :  { %988 = dma.done.wait [#allocation7], 256  }
  0xf2   :  { %989 = vsyncadd [#allocation7], 4294967040 }
  0xf3   :  { %355 = vsyncpa [#allocation7], 1 }
  0xf4   :  { %356 = vsyncmov [#allocation3] }
  0xf7   :  { %s357_s29 = vpop.sfrf %356 }
  0xf8   :  { %p498_p10 = scmp.ne.s32.totalorder %s357_s29, 0 }
  0xfa   :  { %361 = shalt.err (%p498_p10)  }
  0xfb   :  { %363 = vsyncmov [#allocation3 + $0x1] }
  0xfe   :  { %s364_s30 = vpop.sfrf %363 }
  0xff   :  { %p499_p11 = scmp.ne.s32.totalorder %s364_s30, 0 }
 0x101   :  { %368 = shalt.err (%p499_p11)  }
 0x102   :  { %370 = vsyncmov [#allocation3 + $0x2] }
 0x105   :  { %s371_s2 = vpop.sfrf %370 }
 0x106   :  { %p500_p12 = scmp.ne.s32.totalorder %s371_s2, 0 }
 0x108   :  { %375 = shalt.err (%p500_p12)  }
 0x109   :  { %377 = vsyncmov [#allocation3 + $0x3] }
 0x10c   :  { %s378_s3 = vpop.sfrf %377 }
 0x10d   :  { %p501_p13 = scmp.ne.s32.totalorder %s378_s3, 0 }
 0x10f   :  { %382 = shalt.err (%p501_p13)  }
 0x110   :  { %384 = vsyncmov [#allocation3 + $0x4] }
 0x113   :  { %s385_s21 = vpop.sfrf %384 }
 0x114   :  { %p502_p0 = scmp.ne.s32.totalorder %s385_s21, 0 }
 0x116   :  { %389 = shalt.err (%p502_p0)  }
 0x117   :  { %391 = vsyncmov [#allocation3 + $0x5] }
 0x11a   :  { %s392_s4 = vpop.sfrf %391 }
 0x11b   :  { %p503_p1 = scmp.ne.s32.totalorder %s392_s4, 0 }
 0x11d   :  { %396 = shalt.err (%p503_p1)  }
 0x11e   :  { %398 = vsyncmov [#allocation3 + $0x6] }
 0x121   :  { %s399_s20 = vpop.sfrf %398 }
 0x122   :  { %p504_p2 = scmp.ne.s32.totalorder %s399_s20, 0 }
 0x124   :  { %403 = shalt.err (%p504_p2)  }
 0x125   :  { %405 = vsyncmov [#allocation3 + $0x7] }
 0x128   :  { %s406_s5 = vpop.sfrf %405 }
 0x129   :  { %p505_p3 = scmp.ne.s32.totalorder %s406_s5, 0 }
 0x12b   :  { %410 = shalt.err (%p505_p3)  }
 0x12c   :  { %412 = vsyncmov [#allocation3 + $0x8] }
 0x12f   :  { %s413_s7 = vpop.sfrf %412 }
 0x130   :  { %p506_p4 = scmp.ne.s32.totalorder %s413_s7, 0 }
 0x132   :  { %417 = shalt.err (%p506_p4)  }
 0x133   :  { %419 = vsyncmov [#allocation3 + $0x9] }
 0x136   :  { %s420_s9 = vpop.sfrf %419 }
 0x137   :  { %p507_p5 = scmp.ne.s32.totalorder %s420_s9, 0 }
 0x139   :  { %424 = shalt.err (%p507_p5)  }
 0x13a   :  { %426 = vsyncmov [#allocation3 + $0xa] }
 0x13d   :  { %s427_s10 = vpop.sfrf %426 }
 0x13e   :  { %p508_p6 = scmp.ne.s32.totalorder %s427_s10, 0 }
 0x140   :  { %431 = shalt.err (%p508_p6)  }
 0x141   :  { %433 = vsyncmov [#allocation3 + $0xb] }
 0x144   :  { %s434_s11 = vpop.sfrf %433 }
 0x145   :  { %p509_p7 = scmp.ne.s32.totalorder %s434_s11, 0 }
 0x147   :  { %438 = shalt.err (%p509_p7)  }
 0x148   :  { %440 = vsyncmov [#allocation3 + $0xc] }
 0x14b   :  { %s441_s12 = vpop.sfrf %440 }
 0x14c   :  { %p510_p8 = scmp.ne.s32.totalorder %s441_s12, 0 }
 0x14e   :  { %445 = shalt.err (%p510_p8)  }
 0x14f   :  { %447 = vsyncmov [#allocation3 + $0xd] }
 0x152   :  { %s448_s8 = vpop.sfrf %447 }
 0x153   :  { %p511_p9 = scmp.ne.s32.totalorder %s448_s8, 0 }
 0x155   :  { %452 = shalt.err (%p511_p9)  }
 0x156   :  { %454 = vsyncmov [#allocation3 + $0xe] }
 0x159   :  { %s455_s14 = vpop.sfrf %454 }
 0x15a   :  { %p512_p10 = scmp.ne.s32.totalorder %s455_s14, 0 }
 0x15c   :  { %459 = shalt.err (%p512_p10)  }
 0x15d   :  { %461 = vsyncmov [#allocation3 + $0xf] }
 0x160   :  { %s462_s15 = vpop.sfrf %461 }
 0x161   :  { %p513_p11 = scmp.ne.s32.totalorder %s462_s15, 0 }
 0x163   :  { %466 = shalt.err (%p513_p11)  }

</bundles_post_ra>
